<compile_context>
chip_gen: v7x
topology: tpu7x:2x2x1
jax: 0.10.0
libtpu: 0.0.40
codegen_flags: <defaults>
</compile_context>

<pallas_src>
import math

import jax
import jax.numpy as jnp
from jax import lax
from jax.experimental import pallas as pl
from jax.experimental.pallas import tpu as pltpu

# ----------------------------- model config (small ViT) ---------------------
IMG = 32               # image spatial size
PATCH = 16             # patch size (ViT-B/16 style)
C_IN = 3               # RGB
HIDDEN = 32            # embedding dim
HEADS = 4
HEAD_DIM = HIDDEN // HEADS
MLP_DIM = 64
LAYERS = 2
NUM_CLASSES = 3
N_PATCH = (IMG // PATCH) ** 2
SEQ = N_PATCH + 1      # +1 class token (= 5)
SEQ_PAD = 8            # padded to a full sublane tile
PATCH_DIM = C_IN * PATCH * PATCH          # 768
HEAD_PAD = 128         # lane-dense padded classifier-head width
SLAB_LANES = 128       # lane width of the packed weight slabs
LN_EPS = 1e-6          # torchvision ViT uses LayerNorm(eps=1e-6)
ATTN_SCALE = 1.0 / math.sqrt(HEAD_DIM)


# ----------------------------- weight-slab layouts ---------------------------
def _w_layout():
    """Row offsets of every matmul weight inside the bf16 slab (static)."""
    offs, off = {}, 0

    def add(name, rows):
        nonlocal off
        offs[name] = off
        off += rows

    add("patch_w", PATCH_DIM)
    for l in range(LAYERS):
        add(f"qkv_w{l}", HIDDEN)
        add(f"proj_w{l}", HIDDEN)
        add(f"fc1_w{l}", HIDDEN)
        add(f"fc2_w{l}", MLP_DIM)
    add("head_w", HIDDEN)
    return offs, off


W_OFF, W_ROWS = _w_layout()          # all offsets are multiples of 16 (bf16 tile)

# f32 param slab: (NUM_PBLOCKS, 8, 128) blocks
P_TOKBIAS = 0                        # rows = per-token bias (cls+pos / b+pos / 0)
# blocks 1..LAYERS  : per-layer rows [ln1_g, ln1_b, qkv_b, proj_b,
#                                      ln2_g, ln2_b, fc1_b, fc2_b]
P_FINAL = LAYERS + 1                 # rows [ln_f_g, ln_f_b, head_b, 0...]
NUM_PBLOCKS = LAYERS + 2


# ----------------------------- in-kernel helpers ------------------------------
def _layernorm(x, g, b):
    mu = jnp.mean(x, axis=-1, keepdims=True)
    xc = x - mu
    var = jnp.mean(xc * xc, axis=-1, keepdims=True)
    return xc * lax.rsqrt(var + LN_EPS) * g + b


def _gelu(y):
    # exact erf-GELU, matching torch.nn.GELU()
    return 0.5 * y * (1.0 + lax.erf(y * (1.0 / math.sqrt(2.0))))


def _mm(x_f32, w_bf16):
    # bf16 x bf16 matmul with f32 accumulation (MXU-native on v6e/v7x)
    return jnp.dot(x_f32.astype(jnp.bfloat16), w_bf16,
                   preferred_element_type=jnp.float32)


# ----------------------------- fused forward kernel ---------------------------
def _vit_kernel(patches_ref, w_ref, p_ref, out_ref):
    # patches_ref: (BT, SEQ_PAD, PATCH_DIM) f32   row 0 / rows 5..7 are zeros
    # w_ref:       (W_ROWS, 128) bf16             all matmul weights
    # p_ref:       (NUM_PBLOCKS, 8, 128) f32      token bias / LN params / biases
    # out_ref:     (BT, SEQ_PAD, HEAD_PAD) f32    logits (cls row used outside)
    BT = patches_ref.shape[0]
    R = BT * SEQ_PAD

    def wslice(name, rows, cols):
        off = W_OFF[name]
        return w_ref[off:off + rows, 0:cols]

    # ---- patch embedding (conv as matmul) + folded cls/pos/conv-bias rows ----
    patches = patches_ref[...].reshape(R, PATCH_DIM)
    tok = _mm(patches, wslice("patch_w", PATCH_DIM, HIDDEN))          # (R, D)
    tok_bias = p_ref[P_TOKBIAS][:, 0:HIDDEN]                          # (8, D)
    h = (tok.reshape(BT, SEQ_PAD, HIDDEN) + tok_bias[None, :, :]).reshape(R, HIDDEN)
    # (dropout = identity in eval)

    # additive key mask for the 3 pad key columns of every image
    kcol = lax.broadcasted_iota(jnp.int32, (1, 1, SEQ_PAD), 2)
    kbias = jnp.where(kcol < SEQ, 0.0, -1e30).astype(jnp.float32)     # (1,1,8)

    # ---- encoder layers: weights resident in VMEM, static unrolled loop ----
    for l in range(LAYERS):
        blk = p_ref[1 + l]                                            # (8,128)
        ln1_g, ln1_b = blk[0:1, 0:HIDDEN], blk[1:2, 0:HIDDEN]
        qkv_b, proj_b = blk[2:3, 0:3 * HIDDEN], blk[3:4, 0:HIDDEN]
        ln2_g, ln2_b = blk[4:5, 0:HIDDEN], blk[5:6, 0:HIDDEN]
        fc1_b, fc2_b = blk[6:7, 0:MLP_DIM], blk[7:8, 0:HIDDEN]

        # --- attention block ---
        y = _layernorm(h, ln1_g, ln1_b)
        qkv = _mm(y, wslice(f"qkv_w{l}", HIDDEN, 3 * HIDDEN)) + qkv_b  # (R, 3D)

        heads_out = []
        for hd in range(HEADS):
            lo = hd * HEAD_DIM
            qh = qkv[:, lo:lo + HEAD_DIM].reshape(BT, SEQ_PAD, HEAD_DIM)
            kh = qkv[:, HIDDEN + lo:HIDDEN + lo + HEAD_DIM].reshape(BT, SEQ_PAD, HEAD_DIM)
            vh = qkv[:, 2 * HIDDEN + lo:2 * HIDDEN + lo + HEAD_DIM].reshape(BT, SEQ_PAD, HEAD_DIM)
            s = jnp.einsum("bqd,bkd->bqk", qh, kh,
                           preferred_element_type=jnp.float32)
            s = s * ATTN_SCALE + kbias
            s = s - jnp.max(s, axis=-1, keepdims=True)
            p = jnp.exp(s)
            p = p / jnp.sum(p, axis=-1, keepdims=True)                 # exact softmax
            heads_out.append(jnp.einsum("bqk,bkd->bqd", p, vh,
                                        preferred_element_type=jnp.float32))
        ctx = jnp.concatenate(heads_out, axis=-1).reshape(R, HIDDEN)
        attn = _mm(ctx, wslice(f"proj_w{l}", HIDDEN, HIDDEN)) + proj_b
        h = h + attn

        # --- MLP block ---
        z = _layernorm(h, ln2_g, ln2_b)
        z = _gelu(_mm(z, wslice(f"fc1_w{l}", HIDDEN, MLP_DIM)) + fc1_b)
        z = _mm(z, wslice(f"fc2_w{l}", MLP_DIM, HIDDEN)) + fc2_b
        h = h + z

    # ---- final LN + zero-padded classification head (lane-dense store) ----
    fblk = p_ref[P_FINAL]
    hf = _layernorm(h, fblk[0:1, 0:HIDDEN], fblk[1:2, 0:HIDDEN])
    logits = _mm(hf, wslice("head_w", HIDDEN, HEAD_PAD)) + fblk[2:3, 0:HEAD_PAD]
    out_ref[...] = logits.reshape(BT, SEQ_PAD, HEAD_PAD)


# ----------------------------- parameters ------------------------------------
def init_params(key):
    def nrm(k, shape, std=0.02):
        return jax.random.normal(k, shape, jnp.float32) * std

    ks = iter(jax.random.split(key, 8))
    p = {}
    # conv_proj (Conv2d C_IN->HIDDEN, kernel=stride=PATCH) as a matmul weight
    p["patch_w"] = nrm(next(ks), (PATCH_DIM, HIDDEN))
    p["patch_b"] = jnp.zeros((HIDDEN,), jnp.float32)
    p["cls"] = nrm(next(ks), (HIDDEN,))
    p["pos"] = nrm(next(ks), (SEQ, HIDDEN))
    # encoder-layer weights stacked along a leading LAYERS axis
    p["ln1_g"] = jnp.ones((LAYERS, HIDDEN), jnp.float32)
    p["ln1_b"] = jnp.zeros((LAYERS, HIDDEN), jnp.float32)
    p["qkv_w"] = nrm(next(ks), (LAYERS, HIDDEN, 3 * HIDDEN))   # [q|k|v] columns
    p["qkv_b"] = jnp.zeros((LAYERS, 3 * HIDDEN), jnp.float32)
    p["proj_w"] = nrm(next(ks), (LAYERS, HIDDEN, HIDDEN))
    p["proj_b"] = jnp.zeros((LAYERS, HIDDEN), jnp.float32)
    p["ln2_g"] = jnp.ones((LAYERS, HIDDEN), jnp.float32)
    p["ln2_b"] = jnp.zeros((LAYERS, HIDDEN), jnp.float32)
    p["fc1_w"] = nrm(next(ks), (LAYERS, HIDDEN, MLP_DIM))
    p["fc1_b"] = jnp.zeros((LAYERS, MLP_DIM), jnp.float32)
    p["fc2_w"] = nrm(next(ks), (LAYERS, MLP_DIM, HIDDEN))
    p["fc2_b"] = jnp.zeros((LAYERS, HIDDEN), jnp.float32)
    p["ln_f_g"] = jnp.ones((HIDDEN,), jnp.float32)
    p["ln_f_b"] = jnp.zeros((HIDDEN,), jnp.float32)
    # replaced classification head Linear(HIDDEN, NUM_CLASSES)
    p["head_w"] = nrm(next(ks), (HIDDEN, NUM_CLASSES))
    p["head_b"] = jnp.zeros((NUM_CLASSES,), jnp.float32)
    return p


def pack_params(params):
    """Coalesce all weights into one bf16 matmul slab + one f32 param slab."""
    def wpad(a):
        return jnp.pad(a, ((0, 0), (0, SLAB_LANES - a.shape[1])))

    pieces = [params["patch_w"]]
    for l in range(LAYERS):
        pieces += [params["qkv_w"][l], params["proj_w"][l],
                   params["fc1_w"][l], params["fc2_w"][l]]
    pieces.append(params["head_w"])           # zero-padded to 128 output lanes
    w_slab = jnp.concatenate([wpad(p) for p in pieces], axis=0).astype(jnp.bfloat16)
    assert w_slab.shape == (W_ROWS, SLAB_LANES)

    def row(v):
        v = jnp.asarray(v, jnp.float32).reshape(1, -1)
        return jnp.pad(v, ((0, 0), (0, SLAB_LANES - v.shape[1])))

    # per-token bias: row0 = cls + pos0 ; rows1..4 = conv_bias + pos ; pads = 0
    tok_bias = jnp.zeros((SEQ_PAD, HIDDEN), jnp.float32)
    tok_bias = tok_bias.at[0, :].set(params["cls"] + params["pos"][0])
    tok_bias = tok_bias.at[1:SEQ, :].set(params["pos"][1:SEQ] + params["patch_b"][None, :])
    blocks = [jnp.pad(tok_bias, ((0, 0), (0, SLAB_LANES - HIDDEN)))]

    for l in range(LAYERS):
        rows = [params["ln1_g"][l], params["ln1_b"][l],
                params["qkv_b"][l], params["proj_b"][l],
                params["ln2_g"][l], params["ln2_b"][l],
                params["fc1_b"][l], params["fc2_b"][l]]
        blocks.append(jnp.concatenate([row(r) for r in rows], axis=0))

    final = jnp.concatenate(
        [row(params["ln_f_g"]), row(params["ln_f_b"]), row(params["head_b"]),
         jnp.zeros((SEQ_PAD - 3, SLAB_LANES), jnp.float32)], axis=0)
    blocks.append(final)
    p_slab = jnp.stack(blocks, axis=0)        # (NUM_PBLOCKS, 8, 128)
    assert p_slab.shape == (NUM_PBLOCKS, SEQ_PAD, SLAB_LANES)
    return w_slab, p_slab


# ----------------------------- forward pass -----------------------------------
def patchify(x):
    # x: (B, C, H, W) NCHW -> (B, N_PATCH, C*P*P); patch order = (row, col),
    # per-patch feature order = (c, ph, pw), matching Conv2d(kernel=stride=P).
    B = x.shape[0]
    nh = IMG // PATCH
    x = x.reshape(B, C_IN, nh, PATCH, nh, PATCH)
    x = x.transpose(0, 2, 4, 1, 3, 5)
    return x.reshape(B, nh * nh, PATCH_DIM)


def fish_classifier_forward(w_slab, p_slab, x, block_batch=None):
    """block_batch: images per grid step. Default = whole batch (one grid step,
    optimal on single-TC v5e/v6e). On v7x pass block_batch=B//2 so two
    'parallel' grid steps are sharded across its two TensorCores."""
    B = x.shape[0]
    bt = B if block_batch is None else max(1, min(block_batch, B))
    num_steps = (B + bt - 1) // bt
    B_pad = num_steps * bt

    patches = patchify(x)                                    # (B, N_PATCH, 768)
    # pad: row 0 = cls slot (zeros), rows SEQ..SEQ_PAD-1 = pad rows (zeros)
    tok_in = jnp.pad(patches,
                     ((0, B_pad - B), (1, SEQ_PAD - 1 - N_PATCH), (0, 0)))

    out = pl.pallas_call(
        _vit_kernel,
        out_shape=jax.ShapeDtypeStruct((B_pad, SEQ_PAD, HEAD_PAD), jnp.float32),
        grid_spec=pltpu.PrefetchScalarGridSpec(
            num_scalar_prefetch=0,
            grid=(num_steps,),
            in_specs=[
                pl.BlockSpec((bt, SEQ_PAD, PATCH_DIM), lambda s: (s, 0, 0)),
                pl.BlockSpec((W_ROWS, SLAB_LANES), lambda s: (0, 0)),
                pl.BlockSpec((NUM_PBLOCKS, SEQ_PAD, SLAB_LANES),
                             lambda s: (0, 0, 0)),
            ],
            out_specs=pl.BlockSpec((bt, SEQ_PAD, HEAD_PAD), lambda s: (s, 0, 0)),
        ),
        compiler_params=pltpu.CompilerParams(
            dimension_semantics=("parallel",)),
    )(tok_in, w_slab, p_slab)

    return out[:B, 0, :NUM_CLASSES]                          # (B, NUM_CLASSES)


# ----------------------------- main -------------------------------------------
if __name__ == "__main__":
    key = jax.random.PRNGKey(0)
    pkey, xkey = jax.random.split(key)
    params = init_params(pkey)
    w_slab, p_slab = pack_params(params)
    # small synthetic "fish image" batch, NCHW like the PyTorch module expects
    x = jax.random.normal(xkey, (2, C_IN, IMG, IMG), jnp.float32)

    logits = jax.jit(fish_classifier_forward)(w_slab, p_slab, x)
    jax.block_until_ready(logits)
    assert logits.shape == (2, NUM_CLASSES)
    assert bool(jnp.all(jnp.isfinite(logits)))
    print("KERNEL_OK")
</pallas_src>

<mosaic_0001>
module attributes {stable_mosaic.version = 11 : i64} {
  func.func @_vit_kernel(%arg0: i32, %arg1: memref<2x8x768xf32, #tpu.memory_space<vmem>>, %arg2: memref<1120x128xbf16, #tpu.memory_space<vmem>>, %arg3: memref<4x8x128xf32, #tpu.memory_space<vmem>>, %arg4: memref<2x8x128xf32, #tpu.memory_space<vmem>>) attributes {dimension_semantics = [#tpu.dimension_semantics<parallel>], iteration_bounds = array<i64: 1>, scalar_prefetch = 0 : i64, scratch_operands = 0 : i64, tpu.core_type = #tpu.core_type<tc>, window_params = [{transform_indices = @transform_0, window_bounds = array<i64: 2, 8, 768>}, {pipeline_mode = #tpu.pipeline_mode<synchronous>, transform_indices = @transform_1, window_bounds = array<i64: 1120, 128>}, {pipeline_mode = #tpu.pipeline_mode<synchronous>, transform_indices = @transform_2, window_bounds = array<i64: 4, 8, 128>}, {transform_indices = @transform_3, window_bounds = array<i64: 2, 8, 128>}]} {
    %c0 = arith.constant 0 : index
    %c0_0 = arith.constant 0 : index
    %c0_1 = arith.constant 0 : index
    %0 = vector.load %arg1[%c0, %c0_0, %c0_1] : memref<2x8x768xf32, #tpu.memory_space<vmem>>, vector<2x8x768xf32>
    %1 = vector.shape_cast %0 : vector<2x8x768xf32> to vector<16x768xf32>
    %c0_2 = arith.constant 0 : index
    %c0_3 = arith.constant 0 : index
    %2 = vector.load %arg2[%c0_2, %c0_3] : memref<1120x128xbf16, #tpu.memory_space<vmem>>, vector<768x32xbf16>
    %3 = arith.truncf %1 : vector<16x768xf32> to vector<16x768xbf16>
    %cst = arith.constant dense<0.000000e+00> : vector<16x32xf32>
    %4 = tpu.matmul %3, %2, %cst {dimension_numbers = #tpu.dot_dimension_numbers<[1], [0], [0], [1], [0, 0, 1, 1], [], []>} : vector<16x768xbf16>, vector<768x32xbf16>, vector<16x32xf32> -> vector<16x32xf32>
    %c0_4 = arith.constant 0 : index
    %c0_5 = arith.constant 0 : index
    %c0_6 = arith.constant 0 : index
    %5 = vector.load %arg3[%c0_4, %c0_5, %c0_6] : memref<4x8x128xf32, #tpu.memory_space<vmem>>, vector<1x8x128xf32>
    %6 = vector.shape_cast %5 : vector<1x8x128xf32> to vector<8x128xf32>
    %7 = vector.extract_strided_slice %6 {offsets = [0, 0], sizes = [8, 32], strides = [1, 1]} : vector<8x128xf32> to vector<8x32xf32>
    %8 = vector.shape_cast %4 : vector<16x32xf32> to vector<2x8x32xf32>
    %9 = vector.shape_cast %7 : vector<8x32xf32> to vector<1x8x32xf32>
    %10 = vector.broadcast %9 : vector<1x8x32xf32> to vector<2x8x32xf32>
    %11 = arith.addf %8, %10 : vector<2x8x32xf32>
    %12 = vector.shape_cast %11 : vector<2x8x32xf32> to vector<16x32xf32>
    %13 = tpu.iota {dimensions = array<i32: 2>} : vector<1x1x8xi32>
    %c5_i32 = arith.constant 5 : i32
    %14 = vector.broadcast %c5_i32 : i32 to vector<1x1x8xi32>
    %15 = arith.cmpi slt, %13, %14 : vector<1x1x8xi32>
    %cst_7 = arith.constant 0.000000e+00 : f32
    %cst_8 = arith.constant -1.000000e+30 : f32
    %16 = vector.broadcast %cst_7 : f32 to vector<1x1x8xf32>
    %17 = vector.broadcast %cst_8 : f32 to vector<1x1x8xf32>
    %18 = arith.select %15, %16, %17 : vector<1x1x8xi1>, vector<1x1x8xf32>
    %c1 = arith.constant 1 : index
    %c0_9 = arith.constant 0 : index
    %c0_10 = arith.constant 0 : index
    %19 = vector.load %arg3[%c1, %c0_9, %c0_10] : memref<4x8x128xf32, #tpu.memory_space<vmem>>, vector<1x8x128xf32>
    %20 = vector.shape_cast %19 : vector<1x8x128xf32> to vector<8x128xf32>
    %21 = vector.extract_strided_slice %20 {offsets = [0, 0], sizes = [1, 32], strides = [1, 1]} : vector<8x128xf32> to vector<1x32xf32>
    %22 = vector.extract_strided_slice %20 {offsets = [1, 0], sizes = [1, 32], strides = [1, 1]} : vector<8x128xf32> to vector<1x32xf32>
    %23 = vector.extract_strided_slice %20 {offsets = [2, 0], sizes = [1, 96], strides = [1, 1]} : vector<8x128xf32> to vector<1x96xf32>
    %24 = vector.extract_strided_slice %20 {offsets = [3, 0], sizes = [1, 32], strides = [1, 1]} : vector<8x128xf32> to vector<1x32xf32>
    %25 = vector.extract_strided_slice %20 {offsets = [4, 0], sizes = [1, 32], strides = [1, 1]} : vector<8x128xf32> to vector<1x32xf32>
    %26 = vector.extract_strided_slice %20 {offsets = [5, 0], sizes = [1, 32], strides = [1, 1]} : vector<8x128xf32> to vector<1x32xf32>
    %27 = vector.extract_strided_slice %20 {offsets = [6, 0], sizes = [1, 64], strides = [1, 1]} : vector<8x128xf32> to vector<1x64xf32>
    %28 = vector.extract_strided_slice %20 {offsets = [7, 0], sizes = [1, 32], strides = [1, 1]} : vector<8x128xf32> to vector<1x32xf32>
    %cst_11 = arith.constant dense<0.000000e+00> : vector<16xf32>
    %29 = vector.multi_reduction <add>, %12, %cst_11 [1] : vector<16x32xf32> to vector<16xf32>
    %30 = vector.shape_cast %29 : vector<16xf32> to vector<16x1xf32>
    %cst_12 = arith.constant 3.200000e+01 : f32
    %31 = vector.broadcast %cst_12 : f32 to vector<16x1xf32>
    %32 = arith.divf %30, %31 : vector<16x1xf32>
    %33 = vector.broadcast %32 : vector<16x1xf32> to vector<16x32xf32>
    %34 = arith.subf %12, %33 : vector<16x32xf32>
    %35 = arith.mulf %34, %34 : vector<16x32xf32>
    %cst_13 = arith.constant dense<0.000000e+00> : vector<16xf32>
    %36 = vector.multi_reduction <add>, %35, %cst_13 [1] : vector<16x32xf32> to vector<16xf32>
    %37 = vector.shape_cast %36 : vector<16xf32> to vector<16x1xf32>
    %cst_14 = arith.constant 3.200000e+01 : f32
    %38 = vector.broadcast %cst_14 : f32 to vector<16x1xf32>
    %39 = arith.divf %37, %38 : vector<16x1xf32>
    %cst_15 = arith.constant 9.99999997E-7 : f32
    %40 = vector.broadcast %cst_15 : f32 to vector<16x1xf32>
    %41 = arith.addf %39, %40 : vector<16x1xf32>
    %42 = math.rsqrt %41 : vector<16x1xf32>
    %43 = vector.broadcast %42 : vector<16x1xf32> to vector<16x32xf32>
    %44 = arith.mulf %34, %43 : vector<16x32xf32>
    %45 = vector.broadcast %21 : vector<1x32xf32> to vector<16x32xf32>
    %46 = arith.mulf %44, %45 : vector<16x32xf32>
    %47 = vector.broadcast %22 : vector<1x32xf32> to vector<16x32xf32>
    %48 = arith.addf %46, %47 : vector<16x32xf32>
    %c768 = arith.constant 768 : index
    %c0_16 = arith.constant 0 : index
    %49 = vector.load %arg2[%c768, %c0_16] : memref<1120x128xbf16, #tpu.memory_space<vmem>>, vector<32x96xbf16>
    %50 = arith.truncf %48 : vector<16x32xf32> to vector<16x32xbf16>
    %cst_17 = arith.constant dense<0.000000e+00> : vector<16x96xf32>
    %51 = tpu.matmul %50, %49, %cst_17 {dimension_numbers = #tpu.dot_dimension_numbers<[1], [0], [0], [1], [0, 0, 1, 1], [], []>} : vector<16x32xbf16>, vector<32x96xbf16>, vector<16x96xf32> -> vector<16x96xf32>
    %52 = vector.broadcast %23 : vector<1x96xf32> to vector<16x96xf32>
    %53 = arith.addf %51, %52 : vector<16x96xf32>
    %54 = vector.extract_strided_slice %53 {offsets = [0, 0], sizes = [16, 8], strides = [1, 1]} : vector<16x96xf32> to vector<16x8xf32>
    %55 = vector.shape_cast %54 : vector<16x8xf32> to vector<2x8x8xf32>
    %56 = vector.extract_strided_slice %53 {offsets = [0, 32], sizes = [16, 8], strides = [1, 1]} : vector<16x96xf32> to vector<16x8xf32>
    %57 = vector.shape_cast %56 : vector<16x8xf32> to vector<2x8x8xf32>
    %58 = vector.extract_strided_slice %53 {offsets = [0, 64], sizes = [16, 8], strides = [1, 1]} : vector<16x96xf32> to vector<16x8xf32>
    %59 = vector.shape_cast %58 : vector<16x8xf32> to vector<2x8x8xf32>
    "tpu.trace_start"() <{level = 10 : i32, message = "bqd,bkd->bqk"}> : () -> ()
    %cst_18 = arith.constant dense<0.000000e+00> : vector<2x8x8xf32>
    %60 = tpu.matmul %55, %57, %cst_18 {dimension_numbers = #tpu.dot_dimension_numbers<[2], [2], [1], [1], [0, 0, 0, 1, 1, 1], [0], [0]>} : vector<2x8x8xf32>, vector<2x8x8xf32>, vector<2x8x8xf32> -> vector<2x8x8xf32>
    "tpu.trace_stop"() : () -> ()
    %cst_19 = arith.constant 0.353553385 : f32
    %61 = vector.broadcast %cst_19 : f32 to vector<2x8x8xf32>
    %62 = arith.mulf %60, %61 : vector<2x8x8xf32>
    %63 = vector.broadcast %18 : vector<1x1x8xf32> to vector<2x8x8xf32>
    %64 = arith.addf %62, %63 : vector<2x8x8xf32>
    %cst_20 = arith.constant dense<0xFF800000> : vector<2x8xf32>
    %65 = vector.multi_reduction <maximumf>, %64, %cst_20 [2] : vector<2x8x8xf32> to vector<2x8xf32>
    %66 = vector.shape_cast %65 : vector<2x8xf32> to vector<2x8x1xf32>
    %67 = vector.broadcast %66 : vector<2x8x1xf32> to vector<2x8x8xf32>
    %68 = arith.subf %64, %67 : vector<2x8x8xf32>
    %69 = math.exp %68 : vector<2x8x8xf32>
    %cst_21 = arith.constant dense<0.000000e+00> : vector<2x8xf32>
    %70 = vector.multi_reduction <add>, %69, %cst_21 [2] : vector<2x8x8xf32> to vector<2x8xf32>
    %71 = vector.shape_cast %70 : vector<2x8xf32> to vector<2x8x1xf32>
    %72 = vector.broadcast %71 : vector<2x8x1xf32> to vector<2x8x8xf32>
    %73 = arith.divf %69, %72 : vector<2x8x8xf32>
    "tpu.trace_start"() <{level = 10 : i32, message = "bqk,bkd->bqd"}> : () -> ()
    %cst_22 = arith.constant dense<0.000000e+00> : vector<2x8x8xf32>
    %74 = tpu.matmul %73, %59, %cst_22 {dimension_numbers = #tpu.dot_dimension_numbers<[2], [1], [1], [2], [0, 0, 0, 1, 1, 2], [0], [0]>} : vector<2x8x8xf32>, vector<2x8x8xf32>, vector<2x8x8xf32> -> vector<2x8x8xf32>
    "tpu.trace_stop"() : () -> ()
    %75 = vector.extract_strided_slice %53 {offsets = [0, 8], sizes = [16, 8], strides = [1, 1]} : vector<16x96xf32> to vector<16x8xf32>
    %76 = vector.shape_cast %75 : vector<16x8xf32> to vector<2x8x8xf32>
    %77 = vector.extract_strided_slice %53 {offsets = [0, 40], sizes = [16, 8], strides = [1, 1]} : vector<16x96xf32> to vector<16x8xf32>
    %78 = vector.shape_cast %77 : vector<16x8xf32> to vector<2x8x8xf32>
    %79 = vector.extract_strided_slice %53 {offsets = [0, 72], sizes = [16, 8], strides = [1, 1]} : vector<16x96xf32> to vector<16x8xf32>
    %80 = vector.shape_cast %79 : vector<16x8xf32> to vector<2x8x8xf32>
    "tpu.trace_start"() <{level = 10 : i32, message = "bqd,bkd->bqk"}> : () -> ()
    %cst_23 = arith.constant dense<0.000000e+00> : vector<2x8x8xf32>
    %81 = tpu.matmul %76, %78, %cst_23 {dimension_numbers = #tpu.dot_dimension_numbers<[2], [2], [1], [1], [0, 0, 0, 1, 1, 1], [0], [0]>} : vector<2x8x8xf32>, vector<2x8x8xf32>, vector<2x8x8xf32> -> vector<2x8x8xf32>
    "tpu.trace_stop"() : () -> ()
    %cst_24 = arith.constant 0.353553385 : f32
    %82 = vector.broadcast %cst_24 : f32 to vector<2x8x8xf32>
    %83 = arith.mulf %81, %82 : vector<2x8x8xf32>
    %84 = vector.broadcast %18 : vector<1x1x8xf32> to vector<2x8x8xf32>
    %85 = arith.addf %83, %84 : vector<2x8x8xf32>
    %cst_25 = arith.constant dense<0xFF800000> : vector<2x8xf32>
    %86 = vector.multi_reduction <maximumf>, %85, %cst_25 [2] : vector<2x8x8xf32> to vector<2x8xf32>
    %87 = vector.shape_cast %86 : vector<2x8xf32> to vector<2x8x1xf32>
    %88 = vector.broadcast %87 : vector<2x8x1xf32> to vector<2x8x8xf32>
    %89 = arith.subf %85, %88 : vector<2x8x8xf32>
    %90 = math.exp %89 : vector<2x8x8xf32>
    %cst_26 = arith.constant dense<0.000000e+00> : vector<2x8xf32>
    %91 = vector.multi_reduction <add>, %90, %cst_26 [2] : vector<2x8x8xf32> to vector<2x8xf32>
    %92 = vector.shape_cast %91 : vector<2x8xf32> to vector<2x8x1xf32>
    %93 = vector.broadcast %92 : vector<2x8x1xf32> to vector<2x8x8xf32>
    %94 = arith.divf %90, %93 : vector<2x8x8xf32>
    "tpu.trace_start"() <{level = 10 : i32, message = "bqk,bkd->bqd"}> : () -> ()
    %cst_27 = arith.constant dense<0.000000e+00> : vector<2x8x8xf32>
    %95 = tpu.matmul %94, %80, %cst_27 {dimension_numbers = #tpu.dot_dimension_numbers<[2], [1], [1], [2], [0, 0, 0, 1, 1, 2], [0], [0]>} : vector<2x8x8xf32>, vector<2x8x8xf32>, vector<2x8x8xf32> -> vector<2x8x8xf32>
    "tpu.trace_stop"() : () -> ()
    %96 = vector.extract_strided_slice %53 {offsets = [0, 16], sizes = [16, 8], strides = [1, 1]} : vector<16x96xf32> to vector<16x8xf32>
    %97 = vector.shape_cast %96 : vector<16x8xf32> to vector<2x8x8xf32>
    %98 = vector.extract_strided_slice %53 {offsets = [0, 48], sizes = [16, 8], strides = [1, 1]} : vector<16x96xf32> to vector<16x8xf32>
    %99 = vector.shape_cast %98 : vector<16x8xf32> to vector<2x8x8xf32>
    %100 = vector.extract_strided_slice %53 {offsets = [0, 80], sizes = [16, 8], strides = [1, 1]} : vector<16x96xf32> to vector<16x8xf32>
    %101 = vector.shape_cast %100 : vector<16x8xf32> to vector<2x8x8xf32>
    "tpu.trace_start"() <{level = 10 : i32, message = "bqd,bkd->bqk"}> : () -> ()
    %cst_28 = arith.constant dense<0.000000e+00> : vector<2x8x8xf32>
    %102 = tpu.matmul %97, %99, %cst_28 {dimension_numbers = #tpu.dot_dimension_numbers<[2], [2], [1], [1], [0, 0, 0, 1, 1, 1], [0], [0]>} : vector<2x8x8xf32>, vector<2x8x8xf32>, vector<2x8x8xf32> -> vector<2x8x8xf32>
    "tpu.trace_stop"() : () -> ()
    %cst_29 = arith.constant 0.353553385 : f32
    %103 = vector.broadcast %cst_29 : f32 to vector<2x8x8xf32>
    %104 = arith.mulf %102, %103 : vector<2x8x8xf32>
    %105 = vector.broadcast %18 : vector<1x1x8xf32> to vector<2x8x8xf32>
    %106 = arith.addf %104, %105 : vector<2x8x8xf32>
    %cst_30 = arith.constant dense<0xFF800000> : vector<2x8xf32>
    %107 = vector.multi_reduction <maximumf>, %106, %cst_30 [2] : vector<2x8x8xf32> to vector<2x8xf32>
    %108 = vector.shape_cast %107 : vector<2x8xf32> to vector<2x8x1xf32>
    %109 = vector.broadcast %108 : vector<2x8x1xf32> to vector<2x8x8xf32>
    %110 = arith.subf %106, %109 : vector<2x8x8xf32>
    %111 = math.exp %110 : vector<2x8x8xf32>
    %cst_31 = arith.constant dense<0.000000e+00> : vector<2x8xf32>
    %112 = vector.multi_reduction <add>, %111, %cst_31 [2] : vector<2x8x8xf32> to vector<2x8xf32>
    %113 = vector.shape_cast %112 : vector<2x8xf32> to vector<2x8x1xf32>
    %114 = vector.broadcast %113 : vector<2x8x1xf32> to vector<2x8x8xf32>
    %115 = arith.divf %111, %114 : vector<2x8x8xf32>
    "tpu.trace_start"() <{level = 10 : i32, message = "bqk,bkd->bqd"}> : () -> ()
    %cst_32 = arith.constant dense<0.000000e+00> : vector<2x8x8xf32>
    %116 = tpu.matmul %115, %101, %cst_32 {dimension_numbers = #tpu.dot_dimension_numbers<[2], [1], [1], [2], [0, 0, 0, 1, 1, 2], [0], [0]>} : vector<2x8x8xf32>, vector<2x8x8xf32>, vector<2x8x8xf32> -> vector<2x8x8xf32>
    "tpu.trace_stop"() : () -> ()
    %117 = vector.extract_strided_slice %53 {offsets = [0, 24], sizes = [16, 8], strides = [1, 1]} : vector<16x96xf32> to vector<16x8xf32>
    %118 = vector.shape_cast %117 : vector<16x8xf32> to vector<2x8x8xf32>
    %119 = vector.extract_strided_slice %53 {offsets = [0, 56], sizes = [16, 8], strides = [1, 1]} : vector<16x96xf32> to vector<16x8xf32>
    %120 = vector.shape_cast %119 : vector<16x8xf32> to vector<2x8x8xf32>
    %121 = vector.extract_strided_slice %53 {offsets = [0, 88], sizes = [16, 8], strides = [1, 1]} : vector<16x96xf32> to vector<16x8xf32>
    %122 = vector.shape_cast %121 : vector<16x8xf32> to vector<2x8x8xf32>
    "tpu.trace_start"() <{level = 10 : i32, message = "bqd,bkd->bqk"}> : () -> ()
    %cst_33 = arith.constant dense<0.000000e+00> : vector<2x8x8xf32>
    %123 = tpu.matmul %118, %120, %cst_33 {dimension_numbers = #tpu.dot_dimension_numbers<[2], [2], [1], [1], [0, 0, 0, 1, 1, 1], [0], [0]>} : vector<2x8x8xf32>, vector<2x8x8xf32>, vector<2x8x8xf32> -> vector<2x8x8xf32>
    "tpu.trace_stop"() : () -> ()
    %cst_34 = arith.constant 0.353553385 : f32
    %124 = vector.broadcast %cst_34 : f32 to vector<2x8x8xf32>
    %125 = arith.mulf %123, %124 : vector<2x8x8xf32>
    %126 = vector.broadcast %18 : vector<1x1x8xf32> to vector<2x8x8xf32>
    %127 = arith.addf %125, %126 : vector<2x8x8xf32>
    %cst_35 = arith.constant dense<0xFF800000> : vector<2x8xf32>
    %128 = vector.multi_reduction <maximumf>, %127, %cst_35 [2] : vector<2x8x8xf32> to vector<2x8xf32>
    %129 = vector.shape_cast %128 : vector<2x8xf32> to vector<2x8x1xf32>
    %130 = vector.broadcast %129 : vector<2x8x1xf32> to vector<2x8x8xf32>
    %131 = arith.subf %127, %130 : vector<2x8x8xf32>
    %132 = math.exp %131 : vector<2x8x8xf32>
    %cst_36 = arith.constant dense<0.000000e+00> : vector<2x8xf32>
    %133 = vector.multi_reduction <add>, %132, %cst_36 [2] : vector<2x8x8xf32> to vector<2x8xf32>
    %134 = vector.shape_cast %133 : vector<2x8xf32> to vector<2x8x1xf32>
    %135 = vector.broadcast %134 : vector<2x8x1xf32> to vector<2x8x8xf32>
    %136 = arith.divf %132, %135 : vector<2x8x8xf32>
    "tpu.trace_start"() <{level = 10 : i32, message = "bqk,bkd->bqd"}> : () -> ()
    %cst_37 = arith.constant dense<0.000000e+00> : vector<2x8x8xf32>
    %137 = tpu.matmul %136, %122, %cst_37 {dimension_numbers = #tpu.dot_dimension_numbers<[2], [1], [1], [2], [0, 0, 0, 1, 1, 2], [0], [0]>} : vector<2x8x8xf32>, vector<2x8x8xf32>, vector<2x8x8xf32> -> vector<2x8x8xf32>
    "tpu.trace_stop"() : () -> ()
    %138 = tpu.concatenate %74, %95, %116, %137 in 2 : vector<2x8x8xf32>, vector<2x8x8xf32>, vector<2x8x8xf32>, vector<2x8x8xf32> -> vector<2x8x32xf32>
    %139 = vector.shape_cast %138 : vector<2x8x32xf32> to vector<16x32xf32>
    %c800 = arith.constant 800 : index
    %c0_38 = arith.constant 0 : index
    %140 = vector.load %arg2[%c800, %c0_38] : memref<1120x128xbf16, #tpu.memory_space<vmem>>, vector<32x32xbf16>
    %141 = arith.truncf %139 : vector<16x32xf32> to vector<16x32xbf16>
    %cst_39 = arith.constant dense<0.000000e+00> : vector<16x32xf32>
    %142 = tpu.matmul %141, %140, %cst_39 {dimension_numbers = #tpu.dot_dimension_numbers<[1], [0], [0], [1], [0, 0, 1, 1], [], []>} : vector<16x32xbf16>, vector<32x32xbf16>, vector<16x32xf32> -> vector<16x32xf32>
    %143 = vector.broadcast %24 : vector<1x32xf32> to vector<16x32xf32>
    %144 = arith.addf %142, %143 : vector<16x32xf32>
    %145 = arith.addf %12, %144 : vector<16x32xf32>
    %cst_40 = arith.constant dense<0.000000e+00> : vector<16xf32>
    %146 = vector.multi_reduction <add>, %145, %cst_40 [1] : vector<16x32xf32> to vector<16xf32>
    %147 = vector.shape_cast %146 : vector<16xf32> to vector<16x1xf32>
    %cst_41 = arith.constant 3.200000e+01 : f32
    %148 = vector.broadcast %cst_41 : f32 to vector<16x1xf32>
    %149 = arith.divf %147, %148 : vector<16x1xf32>
    %150 = vector.broadcast %149 : vector<16x1xf32> to vector<16x32xf32>
    %151 = arith.subf %145, %150 : vector<16x32xf32>
    %152 = arith.mulf %151, %151 : vector<16x32xf32>
    %cst_42 = arith.constant dense<0.000000e+00> : vector<16xf32>
    %153 = vector.multi_reduction <add>, %152, %cst_42 [1] : vector<16x32xf32> to vector<16xf32>
    %154 = vector.shape_cast %153 : vector<16xf32> to vector<16x1xf32>
    %cst_43 = arith.constant 3.200000e+01 : f32
    %155 = vector.broadcast %cst_43 : f32 to vector<16x1xf32>
    %156 = arith.divf %154, %155 : vector<16x1xf32>
    %cst_44 = arith.constant 9.99999997E-7 : f32
    %157 = vector.broadcast %cst_44 : f32 to vector<16x1xf32>
    %158 = arith.addf %156, %157 : vector<16x1xf32>
    %159 = math.rsqrt %158 : vector<16x1xf32>
    %160 = vector.broadcast %159 : vector<16x1xf32> to vector<16x32xf32>
    %161 = arith.mulf %151, %160 : vector<16x32xf32>
    %162 = vector.broadcast %25 : vector<1x32xf32> to vector<16x32xf32>
    %163 = arith.mulf %161, %162 : vector<16x32xf32>
    %164 = vector.broadcast %26 : vector<1x32xf32> to vector<16x32xf32>
    %165 = arith.addf %163, %164 : vector<16x32xf32>
    %c832 = arith.constant 832 : index
    %c0_45 = arith.constant 0 : index
    %166 = vector.load %arg2[%c832, %c0_45] : memref<1120x128xbf16, #tpu.memory_space<vmem>>, vector<32x64xbf16>
    %167 = arith.truncf %165 : vector<16x32xf32> to vector<16x32xbf16>
    %cst_46 = arith.constant dense<0.000000e+00> : vector<16x64xf32>
    %168 = tpu.matmul %167, %166, %cst_46 {dimension_numbers = #tpu.dot_dimension_numbers<[1], [0], [0], [1], [0, 0, 1, 1], [], []>} : vector<16x32xbf16>, vector<32x64xbf16>, vector<16x64xf32> -> vector<16x64xf32>
    %169 = vector.broadcast %27 : vector<1x64xf32> to vector<16x64xf32>
    %170 = arith.addf %168, %169 : vector<16x64xf32>
    %cst_47 = arith.constant 5.000000e-01 : f32
    %171 = vector.broadcast %cst_47 : f32 to vector<16x64xf32>
    %172 = arith.mulf %171, %170 : vector<16x64xf32>
    %cst_48 = arith.constant 0.707106769 : f32
    %173 = vector.broadcast %cst_48 : f32 to vector<16x64xf32>
    %174 = arith.mulf %170, %173 : vector<16x64xf32>
    %175 = math.erf %174 : vector<16x64xf32>
    %cst_49 = arith.constant 1.000000e+00 : f32
    %176 = vector.broadcast %cst_49 : f32 to vector<16x64xf32>
    %177 = arith.addf %176, %175 : vector<16x64xf32>
    %178 = arith.mulf %172, %177 : vector<16x64xf32>
    %c864 = arith.constant 864 : index
    %c0_50 = arith.constant 0 : index
    %179 = vector.load %arg2[%c864, %c0_50] : memref<1120x128xbf16, #tpu.memory_space<vmem>>, vector<64x32xbf16>
    %180 = arith.truncf %178 : vector<16x64xf32> to vector<16x64xbf16>
    %cst_51 = arith.constant dense<0.000000e+00> : vector<16x32xf32>
    %181 = tpu.matmul %180, %179, %cst_51 {dimension_numbers = #tpu.dot_dimension_numbers<[1], [0], [0], [1], [0, 0, 1, 1], [], []>} : vector<16x64xbf16>, vector<64x32xbf16>, vector<16x32xf32> -> vector<16x32xf32>
    %182 = vector.broadcast %28 : vector<1x32xf32> to vector<16x32xf32>
    %183 = arith.addf %181, %182 : vector<16x32xf32>
    %184 = arith.addf %145, %183 : vector<16x32xf32>
    %c2 = arith.constant 2 : index
    %c0_52 = arith.constant 0 : index
    %c0_53 = arith.constant 0 : index
    %185 = vector.load %arg3[%c2, %c0_52, %c0_53] : memref<4x8x128xf32, #tpu.memory_space<vmem>>, vector<1x8x128xf32>
    %186 = vector.shape_cast %185 : vector<1x8x128xf32> to vector<8x128xf32>
    %187 = vector.extract_strided_slice %186 {offsets = [0, 0], sizes = [1, 32], strides = [1, 1]} : vector<8x128xf32> to vector<1x32xf32>
    %188 = vector.extract_strided_slice %186 {offsets = [1, 0], sizes = [1, 32], strides = [1, 1]} : vector<8x128xf32> to vector<1x32xf32>
    %189 = vector.extract_strided_slice %186 {offsets = [2, 0], sizes = [1, 96], strides = [1, 1]} : vector<8x128xf32> to vector<1x96xf32>
    %190 = vector.extract_strided_slice %186 {offsets = [3, 0], sizes = [1, 32], strides = [1, 1]} : vector<8x128xf32> to vector<1x32xf32>
    %191 = vector.extract_strided_slice %186 {offsets = [4, 0], sizes = [1, 32], strides = [1, 1]} : vector<8x128xf32> to vector<1x32xf32>
    %192 = vector.extract_strided_slice %186 {offsets = [5, 0], sizes = [1, 32], strides = [1, 1]} : vector<8x128xf32> to vector<1x32xf32>
    %193 = vector.extract_strided_slice %186 {offsets = [6, 0], sizes = [1, 64], strides = [1, 1]} : vector<8x128xf32> to vector<1x64xf32>
    %194 = vector.extract_strided_slice %186 {offsets = [7, 0], sizes = [1, 32], strides = [1, 1]} : vector<8x128xf32> to vector<1x32xf32>
    %cst_54 = arith.constant dense<0.000000e+00> : vector<16xf32>
    %195 = vector.multi_reduction <add>, %184, %cst_54 [1] : vector<16x32xf32> to vector<16xf32>
    %196 = vector.shape_cast %195 : vector<16xf32> to vector<16x1xf32>
    %cst_55 = arith.constant 3.200000e+01 : f32
    %197 = vector.broadcast %cst_55 : f32 to vector<16x1xf32>
    %198 = arith.divf %196, %197 : vector<16x1xf32>
    %199 = vector.broadcast %198 : vector<16x1xf32> to vector<16x32xf32>
    %200 = arith.subf %184, %199 : vector<16x32xf32>
    %201 = arith.mulf %200, %200 : vector<16x32xf32>
    %cst_56 = arith.constant dense<0.000000e+00> : vector<16xf32>
    %202 = vector.multi_reduction <add>, %201, %cst_56 [1] : vector<16x32xf32> to vector<16xf32>
    %203 = vector.shape_cast %202 : vector<16xf32> to vector<16x1xf32>
    %cst_57 = arith.constant 3.200000e+01 : f32
    %204 = vector.broadcast %cst_57 : f32 to vector<16x1xf32>
    %205 = arith.divf %203, %204 : vector<16x1xf32>
    %cst_58 = arith.constant 9.99999997E-7 : f32
    %206 = vector.broadcast %cst_58 : f32 to vector<16x1xf32>
    %207 = arith.addf %205, %206 : vector<16x1xf32>
    %208 = math.rsqrt %207 : vector<16x1xf32>
    %209 = vector.broadcast %208 : vector<16x1xf32> to vector<16x32xf32>
    %210 = arith.mulf %200, %209 : vector<16x32xf32>
    %211 = vector.broadcast %187 : vector<1x32xf32> to vector<16x32xf32>
    %212 = arith.mulf %210, %211 : vector<16x32xf32>
    %213 = vector.broadcast %188 : vector<1x32xf32> to vector<16x32xf32>
    %214 = arith.addf %212, %213 : vector<16x32xf32>
    %c928 = arith.constant 928 : index
    %c0_59 = arith.constant 0 : index
    %215 = vector.load %arg2[%c928, %c0_59] : memref<1120x128xbf16, #tpu.memory_space<vmem>>, vector<32x96xbf16>
    %216 = arith.truncf %214 : vector<16x32xf32> to vector<16x32xbf16>
    %cst_60 = arith.constant dense<0.000000e+00> : vector<16x96xf32>
    %217 = tpu.matmul %216, %215, %cst_60 {dimension_numbers = #tpu.dot_dimension_numbers<[1], [0], [0], [1], [0, 0, 1, 1], [], []>} : vector<16x32xbf16>, vector<32x96xbf16>, vector<16x96xf32> -> vector<16x96xf32>
    %218 = vector.broadcast %189 : vector<1x96xf32> to vector<16x96xf32>
    %219 = arith.addf %217, %218 : vector<16x96xf32>
    %220 = vector.extract_strided_slice %219 {offsets = [0, 0], sizes = [16, 8], strides = [1, 1]} : vector<16x96xf32> to vector<16x8xf32>
    %221 = vector.shape_cast %220 : vector<16x8xf32> to vector<2x8x8xf32>
    %222 = vector.extract_strided_slice %219 {offsets = [0, 32], sizes = [16, 8], strides = [1, 1]} : vector<16x96xf32> to vector<16x8xf32>
    %223 = vector.shape_cast %222 : vector<16x8xf32> to vector<2x8x8xf32>
    %224 = vector.extract_strided_slice %219 {offsets = [0, 64], sizes = [16, 8], strides = [1, 1]} : vector<16x96xf32> to vector<16x8xf32>
    %225 = vector.shape_cast %224 : vector<16x8xf32> to vector<2x8x8xf32>
    "tpu.trace_start"() <{level = 10 : i32, message = "bqd,bkd->bqk"}> : () -> ()
    %cst_61 = arith.constant dense<0.000000e+00> : vector<2x8x8xf32>
    %226 = tpu.matmul %221, %223, %cst_61 {dimension_numbers = #tpu.dot_dimension_numbers<[2], [2], [1], [1], [0, 0, 0, 1, 1, 1], [0], [0]>} : vector<2x8x8xf32>, vector<2x8x8xf32>, vector<2x8x8xf32> -> vector<2x8x8xf32>
    "tpu.trace_stop"() : () -> ()
    %cst_62 = arith.constant 0.353553385 : f32
    %227 = vector.broadcast %cst_62 : f32 to vector<2x8x8xf32>
    %228 = arith.mulf %226, %227 : vector<2x8x8xf32>
    %229 = vector.broadcast %18 : vector<1x1x8xf32> to vector<2x8x8xf32>
    %230 = arith.addf %228, %229 : vector<2x8x8xf32>
    %cst_63 = arith.constant dense<0xFF800000> : vector<2x8xf32>
    %231 = vector.multi_reduction <maximumf>, %230, %cst_63 [2] : vector<2x8x8xf32> to vector<2x8xf32>
    %232 = vector.shape_cast %231 : vector<2x8xf32> to vector<2x8x1xf32>
    %233 = vector.broadcast %232 : vector<2x8x1xf32> to vector<2x8x8xf32>
    %234 = arith.subf %230, %233 : vector<2x8x8xf32>
    %235 = math.exp %234 : vector<2x8x8xf32>
    %cst_64 = arith.constant dense<0.000000e+00> : vector<2x8xf32>
    %236 = vector.multi_reduction <add>, %235, %cst_64 [2] : vector<2x8x8xf32> to vector<2x8xf32>
    %237 = vector.shape_cast %236 : vector<2x8xf32> to vector<2x8x1xf32>
    %238 = vector.broadcast %237 : vector<2x8x1xf32> to vector<2x8x8xf32>
    %239 = arith.divf %235, %238 : vector<2x8x8xf32>
    "tpu.trace_start"() <{level = 10 : i32, message = "bqk,bkd->bqd"}> : () -> ()
    %cst_65 = arith.constant dense<0.000000e+00> : vector<2x8x8xf32>
    %240 = tpu.matmul %239, %225, %cst_65 {dimension_numbers = #tpu.dot_dimension_numbers<[2], [1], [1], [2], [0, 0, 0, 1, 1, 2], [0], [0]>} : vector<2x8x8xf32>, vector<2x8x8xf32>, vector<2x8x8xf32> -> vector<2x8x8xf32>
    "tpu.trace_stop"() : () -> ()
    %241 = vector.extract_strided_slice %219 {offsets = [0, 8], sizes = [16, 8], strides = [1, 1]} : vector<16x96xf32> to vector<16x8xf32>
    %242 = vector.shape_cast %241 : vector<16x8xf32> to vector<2x8x8xf32>
    %243 = vector.extract_strided_slice %219 {offsets = [0, 40], sizes = [16, 8], strides = [1, 1]} : vector<16x96xf32> to vector<16x8xf32>
    %244 = vector.shape_cast %243 : vector<16x8xf32> to vector<2x8x8xf32>
    %245 = vector.extract_strided_slice %219 {offsets = [0, 72], sizes = [16, 8], strides = [1, 1]} : vector<16x96xf32> to vector<16x8xf32>
    %246 = vector.shape_cast %245 : vector<16x8xf32> to vector<2x8x8xf32>
    "tpu.trace_start"() <{level = 10 : i32, message = "bqd,bkd->bqk"}> : () -> ()
    %cst_66 = arith.constant dense<0.000000e+00> : vector<2x8x8xf32>
    %247 = tpu.matmul %242, %244, %cst_66 {dimension_numbers = #tpu.dot_dimension_numbers<[2], [2], [1], [1], [0, 0, 0, 1, 1, 1], [0], [0]>} : vector<2x8x8xf32>, vector<2x8x8xf32>, vector<2x8x8xf32> -> vector<2x8x8xf32>
    "tpu.trace_stop"() : () -> ()
    %cst_67 = arith.constant 0.353553385 : f32
    %248 = vector.broadcast %cst_67 : f32 to vector<2x8x8xf32>
    %249 = arith.mulf %247, %248 : vector<2x8x8xf32>
    %250 = vector.broadcast %18 : vector<1x1x8xf32> to vector<2x8x8xf32>
    %251 = arith.addf %249, %250 : vector<2x8x8xf32>
    %cst_68 = arith.constant dense<0xFF800000> : vector<2x8xf32>
    %252 = vector.multi_reduction <maximumf>, %251, %cst_68 [2] : vector<2x8x8xf32> to vector<2x8xf32>
    %253 = vector.shape_cast %252 : vector<2x8xf32> to vector<2x8x1xf32>
    %254 = vector.broadcast %253 : vector<2x8x1xf32> to vector<2x8x8xf32>
    %255 = arith.subf %251, %254 : vector<2x8x8xf32>
    %256 = math.exp %255 : vector<2x8x8xf32>
    %cst_69 = arith.constant dense<0.000000e+00> : vector<2x8xf32>
    %257 = vector.multi_reduction <add>, %256, %cst_69 [2] : vector<2x8x8xf32> to vector<2x8xf32>
    %258 = vector.shape_cast %257 : vector<2x8xf32> to vector<2x8x1xf32>
    %259 = vector.broadcast %258 : vector<2x8x1xf32> to vector<2x8x8xf32>
    %260 = arith.divf %256, %259 : vector<2x8x8xf32>
    "tpu.trace_start"() <{level = 10 : i32, message = "bqk,bkd->bqd"}> : () -> ()
    %cst_70 = arith.constant dense<0.000000e+00> : vector<2x8x8xf32>
    %261 = tpu.matmul %260, %246, %cst_70 {dimension_numbers = #tpu.dot_dimension_numbers<[2], [1], [1], [2], [0, 0, 0, 1, 1, 2], [0], [0]>} : vector<2x8x8xf32>, vector<2x8x8xf32>, vector<2x8x8xf32> -> vector<2x8x8xf32>
    "tpu.trace_stop"() : () -> ()
    %262 = vector.extract_strided_slice %219 {offsets = [0, 16], sizes = [16, 8], strides = [1, 1]} : vector<16x96xf32> to vector<16x8xf32>
    %263 = vector.shape_cast %262 : vector<16x8xf32> to vector<2x8x8xf32>
    %264 = vector.extract_strided_slice %219 {offsets = [0, 48], sizes = [16, 8], strides = [1, 1]} : vector<16x96xf32> to vector<16x8xf32>
    %265 = vector.shape_cast %264 : vector<16x8xf32> to vector<2x8x8xf32>
    %266 = vector.extract_strided_slice %219 {offsets = [0, 80], sizes = [16, 8], strides = [1, 1]} : vector<16x96xf32> to vector<16x8xf32>
    %267 = vector.shape_cast %266 : vector<16x8xf32> to vector<2x8x8xf32>
    "tpu.trace_start"() <{level = 10 : i32, message = "bqd,bkd->bqk"}> : () -> ()
    %cst_71 = arith.constant dense<0.000000e+00> : vector<2x8x8xf32>
    %268 = tpu.matmul %263, %265, %cst_71 {dimension_numbers = #tpu.dot_dimension_numbers<[2], [2], [1], [1], [0, 0, 0, 1, 1, 1], [0], [0]>} : vector<2x8x8xf32>, vector<2x8x8xf32>, vector<2x8x8xf32> -> vector<2x8x8xf32>
    "tpu.trace_stop"() : () -> ()
    %cst_72 = arith.constant 0.353553385 : f32
    %269 = vector.broadcast %cst_72 : f32 to vector<2x8x8xf32>
    %270 = arith.mulf %268, %269 : vector<2x8x8xf32>
    %271 = vector.broadcast %18 : vector<1x1x8xf32> to vector<2x8x8xf32>
    %272 = arith.addf %270, %271 : vector<2x8x8xf32>
    %cst_73 = arith.constant dense<0xFF800000> : vector<2x8xf32>
    %273 = vector.multi_reduction <maximumf>, %272, %cst_73 [2] : vector<2x8x8xf32> to vector<2x8xf32>
    %274 = vector.shape_cast %273 : vector<2x8xf32> to vector<2x8x1xf32>
    %275 = vector.broadcast %274 : vector<2x8x1xf32> to vector<2x8x8xf32>
    %276 = arith.subf %272, %275 : vector<2x8x8xf32>
    %277 = math.exp %276 : vector<2x8x8xf32>
    %cst_74 = arith.constant dense<0.000000e+00> : vector<2x8xf32>
    %278 = vector.multi_reduction <add>, %277, %cst_74 [2] : vector<2x8x8xf32> to vector<2x8xf32>
    %279 = vector.shape_cast %278 : vector<2x8xf32> to vector<2x8x1xf32>
    %280 = vector.broadcast %279 : vector<2x8x1xf32> to vector<2x8x8xf32>
    %281 = arith.divf %277, %280 : vector<2x8x8xf32>
    "tpu.trace_start"() <{level = 10 : i32, message = "bqk,bkd->bqd"}> : () -> ()
    %cst_75 = arith.constant dense<0.000000e+00> : vector<2x8x8xf32>
    %282 = tpu.matmul %281, %267, %cst_75 {dimension_numbers = #tpu.dot_dimension_numbers<[2], [1], [1], [2], [0, 0, 0, 1, 1, 2], [0], [0]>} : vector<2x8x8xf32>, vector<2x8x8xf32>, vector<2x8x8xf32> -> vector<2x8x8xf32>
    "tpu.trace_stop"() : () -> ()
    %283 = vector.extract_strided_slice %219 {offsets = [0, 24], sizes = [16, 8], strides = [1, 1]} : vector<16x96xf32> to vector<16x8xf32>
    %284 = vector.shape_cast %283 : vector<16x8xf32> to vector<2x8x8xf32>
    %285 = vector.extract_strided_slice %219 {offsets = [0, 56], sizes = [16, 8], strides = [1, 1]} : vector<16x96xf32> to vector<16x8xf32>
    %286 = vector.shape_cast %285 : vector<16x8xf32> to vector<2x8x8xf32>
    %287 = vector.extract_strided_slice %219 {offsets = [0, 88], sizes = [16, 8], strides = [1, 1]} : vector<16x96xf32> to vector<16x8xf32>
    %288 = vector.shape_cast %287 : vector<16x8xf32> to vector<2x8x8xf32>
    "tpu.trace_start"() <{level = 10 : i32, message = "bqd,bkd->bqk"}> : () -> ()
    %cst_76 = arith.constant dense<0.000000e+00> : vector<2x8x8xf32>
    %289 = tpu.matmul %284, %286, %cst_76 {dimension_numbers = #tpu.dot_dimension_numbers<[2], [2], [1], [1], [0, 0, 0, 1, 1, 1], [0], [0]>} : vector<2x8x8xf32>, vector<2x8x8xf32>, vector<2x8x8xf32> -> vector<2x8x8xf32>
    "tpu.trace_stop"() : () -> ()
    %cst_77 = arith.constant 0.353553385 : f32
    %290 = vector.broadcast %cst_77 : f32 to vector<2x8x8xf32>
    %291 = arith.mulf %289, %290 : vector<2x8x8xf32>
    %292 = vector.broadcast %18 : vector<1x1x8xf32> to vector<2x8x8xf32>
    %293 = arith.addf %291, %292 : vector<2x8x8xf32>
    %cst_78 = arith.constant dense<0xFF800000> : vector<2x8xf32>
    %294 = vector.multi_reduction <maximumf>, %293, %cst_78 [2] : vector<2x8x8xf32> to vector<2x8xf32>
    %295 = vector.shape_cast %294 : vector<2x8xf32> to vector<2x8x1xf32>
    %296 = vector.broadcast %295 : vector<2x8x1xf32> to vector<2x8x8xf32>
    %297 = arith.subf %293, %296 : vector<2x8x8xf32>
    %298 = math.exp %297 : vector<2x8x8xf32>
    %cst_79 = arith.constant dense<0.000000e+00> : vector<2x8xf32>
    %299 = vector.multi_reduction <add>, %298, %cst_79 [2] : vector<2x8x8xf32> to vector<2x8xf32>
    %300 = vector.shape_cast %299 : vector<2x8xf32> to vector<2x8x1xf32>
    %301 = vector.broadcast %300 : vector<2x8x1xf32> to vector<2x8x8xf32>
    %302 = arith.divf %298, %301 : vector<2x8x8xf32>
    "tpu.trace_start"() <{level = 10 : i32, message = "bqk,bkd->bqd"}> : () -> ()
    %cst_80 = arith.constant dense<0.000000e+00> : vector<2x8x8xf32>
    %303 = tpu.matmul %302, %288, %cst_80 {dimension_numbers = #tpu.dot_dimension_numbers<[2], [1], [1], [2], [0, 0, 0, 1, 1, 2], [0], [0]>} : vector<2x8x8xf32>, vector<2x8x8xf32>, vector<2x8x8xf32> -> vector<2x8x8xf32>
    "tpu.trace_stop"() : () -> ()
    %304 = tpu.concatenate %240, %261, %282, %303 in 2 : vector<2x8x8xf32>, vector<2x8x8xf32>, vector<2x8x8xf32>, vector<2x8x8xf32> -> vector<2x8x32xf32>
    %305 = vector.shape_cast %304 : vector<2x8x32xf32> to vector<16x32xf32>
    %c960 = arith.constant 960 : index
    %c0_81 = arith.constant 0 : index
    %306 = vector.load %arg2[%c960, %c0_81] : memref<1120x128xbf16, #tpu.memory_space<vmem>>, vector<32x32xbf16>
    %307 = arith.truncf %305 : vector<16x32xf32> to vector<16x32xbf16>
    %cst_82 = arith.constant dense<0.000000e+00> : vector<16x32xf32>
    %308 = tpu.matmul %307, %306, %cst_82 {dimension_numbers = #tpu.dot_dimension_numbers<[1], [0], [0], [1], [0, 0, 1, 1], [], []>} : vector<16x32xbf16>, vector<32x32xbf16>, vector<16x32xf32> -> vector<16x32xf32>
    %309 = vector.broadcast %190 : vector<1x32xf32> to vector<16x32xf32>
    %310 = arith.addf %308, %309 : vector<16x32xf32>
    %311 = arith.addf %184, %310 : vector<16x32xf32>
    %cst_83 = arith.constant dense<0.000000e+00> : vector<16xf32>
    %312 = vector.multi_reduction <add>, %311, %cst_83 [1] : vector<16x32xf32> to vector<16xf32>
    %313 = vector.shape_cast %312 : vector<16xf32> to vector<16x1xf32>
    %cst_84 = arith.constant 3.200000e+01 : f32
    %314 = vector.broadcast %cst_84 : f32 to vector<16x1xf32>
    %315 = arith.divf %313, %314 : vector<16x1xf32>
    %316 = vector.broadcast %315 : vector<16x1xf32> to vector<16x32xf32>
    %317 = arith.subf %311, %316 : vector<16x32xf32>
    %318 = arith.mulf %317, %317 : vector<16x32xf32>
    %cst_85 = arith.constant dense<0.000000e+00> : vector<16xf32>
    %319 = vector.multi_reduction <add>, %318, %cst_85 [1] : vector<16x32xf32> to vector<16xf32>
    %320 = vector.shape_cast %319 : vector<16xf32> to vector<16x1xf32>
    %cst_86 = arith.constant 3.200000e+01 : f32
    %321 = vector.broadcast %cst_86 : f32 to vector<16x1xf32>
    %322 = arith.divf %320, %321 : vector<16x1xf32>
    %cst_87 = arith.constant 9.99999997E-7 : f32
    %323 = vector.broadcast %cst_87 : f32 to vector<16x1xf32>
    %324 = arith.addf %322, %323 : vector<16x1xf32>
    %325 = math.rsqrt %324 : vector<16x1xf32>
    %326 = vector.broadcast %325 : vector<16x1xf32> to vector<16x32xf32>
    %327 = arith.mulf %317, %326 : vector<16x32xf32>
    %328 = vector.broadcast %191 : vector<1x32xf32> to vector<16x32xf32>
    %329 = arith.mulf %327, %328 : vector<16x32xf32>
    %330 = vector.broadcast %192 : vector<1x32xf32> to vector<16x32xf32>
    %331 = arith.addf %329, %330 : vector<16x32xf32>
    %c992 = arith.constant 992 : index
    %c0_88 = arith.constant 0 : index
    %332 = vector.load %arg2[%c992, %c0_88] : memref<1120x128xbf16, #tpu.memory_space<vmem>>, vector<32x64xbf16>
    %333 = arith.truncf %331 : vector<16x32xf32> to vector<16x32xbf16>
    %cst_89 = arith.constant dense<0.000000e+00> : vector<16x64xf32>
    %334 = tpu.matmul %333, %332, %cst_89 {dimension_numbers = #tpu.dot_dimension_numbers<[1], [0], [0], [1], [0, 0, 1, 1], [], []>} : vector<16x32xbf16>, vector<32x64xbf16>, vector<16x64xf32> -> vector<16x64xf32>
    %335 = vector.broadcast %193 : vector<1x64xf32> to vector<16x64xf32>
    %336 = arith.addf %334, %335 : vector<16x64xf32>
    %cst_90 = arith.constant 5.000000e-01 : f32
    %337 = vector.broadcast %cst_90 : f32 to vector<16x64xf32>
    %338 = arith.mulf %337, %336 : vector<16x64xf32>
    %cst_91 = arith.constant 0.707106769 : f32
    %339 = vector.broadcast %cst_91 : f32 to vector<16x64xf32>
    %340 = arith.mulf %336, %339 : vector<16x64xf32>
    %341 = math.erf %340 : vector<16x64xf32>
    %cst_92 = arith.constant 1.000000e+00 : f32
    %342 = vector.broadcast %cst_92 : f32 to vector<16x64xf32>
    %343 = arith.addf %342, %341 : vector<16x64xf32>
    %344 = arith.mulf %338, %343 : vector<16x64xf32>
    %c1024 = arith.constant 1024 : index
    %c0_93 = arith.constant 0 : index
    %345 = vector.load %arg2[%c1024, %c0_93] : memref<1120x128xbf16, #tpu.memory_space<vmem>>, vector<64x32xbf16>
    %346 = arith.truncf %344 : vector<16x64xf32> to vector<16x64xbf16>
    %cst_94 = arith.constant dense<0.000000e+00> : vector<16x32xf32>
    %347 = tpu.matmul %346, %345, %cst_94 {dimension_numbers = #tpu.dot_dimension_numbers<[1], [0], [0], [1], [0, 0, 1, 1], [], []>} : vector<16x64xbf16>, vector<64x32xbf16>, vector<16x32xf32> -> vector<16x32xf32>
    %348 = vector.broadcast %194 : vector<1x32xf32> to vector<16x32xf32>
    %349 = arith.addf %347, %348 : vector<16x32xf32>
    %350 = arith.addf %311, %349 : vector<16x32xf32>
    %c3 = arith.constant 3 : index
    %c0_95 = arith.constant 0 : index
    %c0_96 = arith.constant 0 : index
    %351 = vector.load %arg3[%c3, %c0_95, %c0_96] : memref<4x8x128xf32, #tpu.memory_space<vmem>>, vector<1x8x128xf32>
    %352 = vector.shape_cast %351 : vector<1x8x128xf32> to vector<8x128xf32>
    %353 = vector.extract_strided_slice %352 {offsets = [0, 0], sizes = [1, 32], strides = [1, 1]} : vector<8x128xf32> to vector<1x32xf32>
    %354 = vector.extract_strided_slice %352 {offsets = [1, 0], sizes = [1, 32], strides = [1, 1]} : vector<8x128xf32> to vector<1x32xf32>
    %cst_97 = arith.constant dense<0.000000e+00> : vector<16xf32>
    %355 = vector.multi_reduction <add>, %350, %cst_97 [1] : vector<16x32xf32> to vector<16xf32>
    %356 = vector.shape_cast %355 : vector<16xf32> to vector<16x1xf32>
    %cst_98 = arith.constant 3.200000e+01 : f32
    %357 = vector.broadcast %cst_98 : f32 to vector<16x1xf32>
    %358 = arith.divf %356, %357 : vector<16x1xf32>
    %359 = vector.broadcast %358 : vector<16x1xf32> to vector<16x32xf32>
    %360 = arith.subf %350, %359 : vector<16x32xf32>
    %361 = arith.mulf %360, %360 : vector<16x32xf32>
    %cst_99 = arith.constant dense<0.000000e+00> : vector<16xf32>
    %362 = vector.multi_reduction <add>, %361, %cst_99 [1] : vector<16x32xf32> to vector<16xf32>
    %363 = vector.shape_cast %362 : vector<16xf32> to vector<16x1xf32>
    %cst_100 = arith.constant 3.200000e+01 : f32
    %364 = vector.broadcast %cst_100 : f32 to vector<16x1xf32>
    %365 = arith.divf %363, %364 : vector<16x1xf32>
    %cst_101 = arith.constant 9.99999997E-7 : f32
    %366 = vector.broadcast %cst_101 : f32 to vector<16x1xf32>
    %367 = arith.addf %365, %366 : vector<16x1xf32>
    %368 = math.rsqrt %367 : vector<16x1xf32>
    %369 = vector.broadcast %368 : vector<16x1xf32> to vector<16x32xf32>
    %370 = arith.mulf %360, %369 : vector<16x32xf32>
    %371 = vector.broadcast %353 : vector<1x32xf32> to vector<16x32xf32>
    %372 = arith.mulf %370, %371 : vector<16x32xf32>
    %373 = vector.broadcast %354 : vector<1x32xf32> to vector<16x32xf32>
    %374 = arith.addf %372, %373 : vector<16x32xf32>
    %c1088 = arith.constant 1088 : index
    %c0_102 = arith.constant 0 : index
    %375 = vector.load %arg2[%c1088, %c0_102] : memref<1120x128xbf16, #tpu.memory_space<vmem>>, vector<32x128xbf16>
    %376 = arith.truncf %374 : vector<16x32xf32> to vector<16x32xbf16>
    %cst_103 = arith.constant dense<0.000000e+00> : vector<16x128xf32>
    %377 = tpu.matmul %376, %375, %cst_103 {dimension_numbers = #tpu.dot_dimension_numbers<[1], [0], [0], [1], [0, 0, 1, 1], [], []>} : vector<16x32xbf16>, vector<32x128xbf16>, vector<16x128xf32> -> vector<16x128xf32>
    %378 = vector.extract_strided_slice %352 {offsets = [2, 0], sizes = [1, 128], strides = [1, 1]} : vector<8x128xf32> to vector<1x128xf32>
    %379 = vector.broadcast %378 : vector<1x128xf32> to vector<16x128xf32>
    %380 = arith.addf %377, %379 : vector<16x128xf32>
    %381 = vector.shape_cast %380 : vector<16x128xf32> to vector<2x8x128xf32>
    %c0_104 = arith.constant 0 : index
    %c0_105 = arith.constant 0 : index
    %c0_106 = arith.constant 0 : index
    %382 = vector.load %arg4[%c0_104, %c0_105, %c0_106] : memref<2x8x128xf32, #tpu.memory_space<vmem>>, vector<2x8x128xf32>
    tpu.vector_store %arg4[%c0_104, %c0_105, %c0_106], %381 {strides = array<i32>} : memref<2x8x128xf32, #tpu.memory_space<vmem>>, vector<2x8x128xf32>,
    return
  }
  func.func @transform_0(%arg0: i32) -> (i32, i32, i32) {
    %c0_i32 = arith.constant 0 : i32
    %c0_i32_0 = arith.constant 0 : i32
    %c0_i32_1 = arith.constant 0 : i32
    return %arg0, %c0_i32, %c0_i32_0 : i32, i32, i32
  }
  func.func @transform_1(%arg0: i32) -> (i32, i32) {
    %c0_i32 = arith.constant 0 : i32
    %c0_i32_0 = arith.constant 0 : i32
    %c0_i32_1 = arith.constant 0 : i32
    return %c0_i32, %c0_i32_0 : i32, i32
  }
  func.func @transform_2(%arg0: i32) -> (i32, i32, i32) {
    %c0_i32 = arith.constant 0 : i32
    %c0_i32_0 = arith.constant 0 : i32
    %c0_i32_1 = arith.constant 0 : i32
    %c0_i32_2 = arith.constant 0 : i32
    return %c0_i32, %c0_i32_0, %c0_i32_1 : i32, i32, i32
  }
  func.func @transform_3(%arg0: i32) -> (i32, i32, i32) {
    %c0_i32 = arith.constant 0 : i32
    %c0_i32_0 = arith.constant 0 : i32
    %c0_i32_1 = arith.constant 0 : i32
    return %arg0, %c0_i32, %c0_i32_0 : i32, i32, i32
  }
}

</mosaic_0001>

<bundles_post_ra>
// kernel: fish_classifier_forward.1
= control target key start
LH: loop header
LB: loop body
LE: loop exit
PB: predicated region body
PF: predicated region fallthrough
CT: control target
= control target key end

     0   :  { %vm549_vm0 = vcmask 261120   ;;  %vm4869_vm1 = vmmov 0   ;;  %s4870_s4 = smov 96   ;;  %vm657_vm2 = vcmask 64512   ;;  %s4872_s5 = smov 64   ;;  %vm2015_vm4 = vcmask 130048   ;;  %s5685_s1 = inlined_call_operand.vmem [shape: bf16[1120,128], index: 1, kind: input, shape index: {}]   ;;  %s5686_s0 = inlined_call_operand.vmem [shape: f32[2,8,768], index: 0, kind: input, shape index: {}]   ;;  %s5687_s2 = inlined_call_operand.vmem [shape: f32[4,8,128], index: 2, kind: input, shape index: {}]   ;;  %s5688_s3 = inlined_call_operand.vmem [shape: f32[2,8,128], index: 3, kind: output, shape index: {}]  }
   0x1   :  { %v4706_v0 = vld [vmem:[%s5685_s1 + $0x40] sm:$0xff]   ;;  %v4710_v4 = vld [vmem:[%s5685_s1 + $0x48] sm:$0xff]   ;;  %v4714_v8 = vld [vmem:[%s5685_s1 + $0x50] sm:$0xff]   ;;  %s4873_s6 = smov 88   ;;  %s4874_s7 = smov 120   ;;  %vm2018_vm5 = vcmask 195584  }
   0x2   :  { %v4707_v1 = vld [vmem:[%s5685_s1 + $0xc0] sm:$0xff]   ;;  %4258 = vmatprep.subr.bf16.mxu0 %v4706_v0  ;;  %v4711_v5 = vld [vmem:[%s5685_s1 + $0xc8] sm:$0xff]   ;;  %v4715_v9 = vld [vmem:[%s5685_s1 + $0xd0] sm:$0xff]   ;;  %s4875_s8 = smov 56   ;;  %s4876_s9 = smov 80   ;;  %vm2238_vm6 = vcmask 523264  }
   0x3   :  { %v4708_v2 = vld [vmem:[%s5685_s1] sm:$0xff]   ;;  %4280 = vmatprep.subr.bf16.mxu1 %v4707_v1  ;;  %v4712_v6 = vld [vmem:[%s5685_s1 + $0x8] sm:$0xff]   ;;  %v4716_v10 = vld [vmem:[%s5685_s1 + $0x10] sm:$0xff]   ;;  %s4877_s10 = smov 112   ;;  %s4878_s11 = smov 48  }
   0x4   :  { %v4709_v3 = vld [vmem:[%s5685_s1 + $0x80] sm:$0xff]   ;;  %4259 = vmatpush3.bf16.msra.mxu0 %v4708_v2  ;;  %v4713_v7 = vld [vmem:[%s5685_s1 + $0x88] sm:$0xff]   ;;  %v4717_v11 = vld [vmem:[%s5685_s1 + $0x90] sm:$0xff]   ;;  %s4879_s12 = smov 72   ;;  %s4880_s13 = smov 104  }
   0x5   :  { %4281 = vmatpush3.bf16.msra.mxu1 %v4709_v3  ;;  %4260 = vmatprep.subr.bf16.mxu0 %v4710_v4  ;;  %v4718_v12 = vld [vmem:[%s5685_s1 + $0x58] sm:$0xff]   ;;  %v4722_v16 = vld [vmem:[%s5685_s1 + $0x60] sm:$0xff]   ;;  %v4726_v20 = vld [vmem:[%s5685_s1 + $0x68] sm:$0xff]   ;;  %s4881_s14 = smov 40   ;;  %s4882_s15 = smov 8  }
   0x6   :  { %4282 = vmatprep.subr.bf16.mxu1 %v4711_v5  ;;  %v4719_v13 = vld [vmem:[%s5685_s1 + $0xd8] sm:$0xff]   ;;  %v4723_v17 = vld [vmem:[%s5685_s1 + $0xe0] sm:$0xff]   ;;  %v4727_v21 = vld [vmem:[%s5685_s1 + $0xe8] sm:$0xff]   ;;  %s4883_s16 = smov 16   ;;  %s4884_s21 = smov 24  }
   0x7   :  { %v4720_v14 = vld [vmem:[%s5685_s1 + $0x18] sm:$0xff]   ;;  %v4724_v18 = vld [vmem:[%s5685_s1 + $0x20] sm:$0xff]   ;;  %v4728_v22 = vld [vmem:[%s5685_s1 + $0x28] sm:$0xff]  }
   0x8   :  { %4261 = vmatpush3.bf16.msra.mxu0 %v4712_v6  ;;  %v4721_v15 = vld [vmem:[%s5685_s1 + $0x98] sm:$0xff]   ;;  %v4725_v19 = vld [vmem:[%s5685_s1 + $0xa0] sm:$0xff]   ;;  %v4729_v23 = vld [vmem:[%s5685_s1 + $0xa8] sm:$0xff]  }
   0x9   :  { %4283 = vmatpush3.bf16.msra.mxu1 %v4713_v7  ;;  %4262 = vmatprep.subr.bf16.mxu0 %v4714_v8  ;;  %v4730_v24 = vld [vmem:[%s5685_s1 + $0x70] sm:$0xff]   ;;  %v4734_v28 = vld [vmem:[%s5685_s1 + $0x78] sm:$0xff]   ;;  %v16_v32 = vld [vmem:[%s5686_s0 + $0x8] sm:$0xff] }
   0xa   :  { %4284 = vmatprep.subr.bf16.mxu1 %v4715_v9  ;;  %v4731_v25 = vld [vmem:[%s5685_s1 + $0xf0] sm:$0xff]   ;;  %v4735_v29 = vld [vmem:[%s5685_s1 + $0xf8] sm:$0xff]   ;;  %v24_v36 = vld [vmem:[%s5686_s0 + $0x48] sm:$0xff] }
   0xb   :  { %v4732_v26 = vld [vmem:[%s5685_s1 + $0x30] sm:$0xff]   ;;  %v4736_v30 = vld [vmem:[%s5685_s1 + $0x38] sm:$0xff]   ;;  %v15_v37 = vld [vmem:[%s5686_s0] sm:$0xff] }
   0xc   :  { %4263 = vmatpush3.bf16.msra.mxu0 %v4716_v10  ;;  %v4733_v27 = vld [vmem:[%s5685_s1 + $0xb0] sm:$0xff]   ;;  %v4737_v31 = vld [vmem:[%s5685_s1 + $0xb8] sm:$0xff]   ;;  %v23_v42 = vld [vmem:[%s5686_s0 + $0x40] sm:$0xff] }
   0xd   :  { %4285 = vmatpush3.bf16.msra.mxu1 %v4717_v11  ;;  %4264 = vmatprep.subr.bf16.mxu0 %v4718_v12  ;;  %v22_v33 = vld [vmem:[%s5686_s0 + $0x38] sm:$0xff]  ;;  %v21_v38 = vld [vmem:[%s5686_s0 + $0x30] sm:$0xff]  ;;  %v4738_v44 = vld [vmem:[%s5685_s1 + $0x140] sm:$0xff]  }
   0xe   :  { %4286 = vmatprep.subr.bf16.mxu1 %v4719_v13  ;;  %v18_v34 = vld [vmem:[%s5686_s0 + $0x18] sm:$0xff]  ;;  %v124_v35 = vpack.c.bf16 %v22_v33, %v16_v32  ;;  %v123_v40 = vpack.c.bf16 %v21_v38, %v15_v37  ;;  %v17_v41 = vld [vmem:[%s5686_s0 + $0x10] sm:$0xff]  ;;  %v4739_v45 = vld [vmem:[%s5685_s1 + $0x100] sm:$0xff]  }
   0xf   :  { %v126_v39 = vpack.c.bf16 %v24_v36, %v18_v34  ;;  %v125_v43 = vpack.c.bf16 %v23_v42, %v17_v41  ;;  %v4740_v46 = vld [vmem:[%s5685_s1 + $0x148] sm:$0xff]   ;;  %v4742_v48 = vld [vmem:[%s5685_s1 + $0x150] sm:$0xff]   ;;  %v4744_v50 = vld [vmem:[%s5685_s1 + $0x158] sm:$0xff]  }
  0x10   :  { %4265 = vmatpush3.bf16.msra.mxu0 %v4720_v14  ;;  %449 = vmatprep.mubr.bf16.mxu0 %v124_v35  ;;  %v4741_v47 = vld [vmem:[%s5685_s1 + $0x108] sm:$0xff]   ;;  %v4743_v49 = vld [vmem:[%s5685_s1 + $0x110] sm:$0xff]   ;;  %v4745_v51 = vld [vmem:[%s5685_s1 + $0x118] sm:$0xff]  }
  0x11   :  { %4287 = vmatpush3.bf16.msra.mxu1 %v4721_v15  ;;  %4266 = vmatprep.subr.bf16.mxu0 %v4722_v16  ;;  %v4746_v52 = vld [vmem:[%s5685_s1 + $0x160] sm:$0xff]   ;;  %v20_v54 = vld [vmem:[%s5686_s0 + $0x28] sm:$0xff]  ;;  %v26_v56 = vld [vmem:[%s5686_s0 + $0x58] sm:$0xff] }
  0x12   :  { %4288 = vmatprep.subr.bf16.mxu1 %v4723_v17  ;;  %490 = vmatprep.mubr.bf16.mxu1 %v126_v39  ;;  %v4747_v53 = vld [vmem:[%s5685_s1 + $0x120] sm:$0xff]   ;;  %v4748_v55 = vld [vmem:[%s5685_s1 + $0x168] sm:$0xff]   ;;  %v128_v58 = vpack.c.bf16 %v26_v56, %v20_v54  ;;  %v4750_v59 = vld [vmem:[%s5685_s1 + $0x170] sm:$0xff]  }
  0x13   :  { %v4749_v57 = vld [vmem:[%s5685_s1 + $0x128] sm:$0xff]   ;;  %v4751_v60 = vld [vmem:[%s5685_s1 + $0x130] sm:$0xff]   ;;  %v4752_v61 = vld [vmem:[%s5685_s1 + $0x178] sm:$0xff]  }
  0x14   :  { %4267 = vmatpush3.bf16.msra.mxu0 %v4724_v18  ;;  %v4753_v62 = vld [vmem:[%s5685_s1 + $0x138] sm:$0xff]   ;;  %v19_v63 = vld [vmem:[%s5686_s0 + $0x20] sm:$0xff]  ;;  %v25_v0 = vld [vmem:[%s5686_s0 + $0x50] sm:$0xff] }
  0x15   :  { %4289 = vmatpush3.bf16.msra.mxu1 %v4725_v19  ;;  %4268 = vmatprep.subr.bf16.mxu0 %v4726_v20  ;;  %v127_v1 = vpack.c.bf16 %v25_v0, %v19_v63  ;;  %v4754_v39 = vld [vmem:[%s5685_s1 + $0x180] sm:$0xff]   ;;  %v4755_v41 = vld [vmem:[%s5685_s1 + $0x188] sm:$0xff]  }
  0x16   :  { %4290 = vmatprep.subr.bf16.mxu1 %v4727_v21  ;;  %v540_v21 = vld [vmem:[%s5687_s2] sm:$0xff] }
  0x18   :  { %4269 = vmatpush3.bf16.msra.mxu0 %v4728_v22 }
  0x19   :  { %4291 = vmatpush3.bf16.msra.mxu1 %v4729_v23  ;;  %4270 = vmatprep.subr.bf16.mxu0 %v4730_v24 }
  0x1a   :  { %4292 = vmatprep.subr.bf16.mxu1 %v4731_v25 }
  0x1c   :  { %4271 = vmatpush3.bf16.msra.mxu0 %v4732_v26 }
  0x1d   :  { %4293 = vmatpush3.bf16.msra.mxu1 %v4733_v27  ;;  %4272 = vmatprep.subr.bf16.mxu0 %v4734_v28 }
  0x1e   :  { %4294 = vmatprep.subr.bf16.mxu1 %v4735_v29 }
  0x20   :  { %4273 = vmatpush3.bf16.msra.mxu0 %v4736_v30 }
  0x21   :  { %4295 = vmatpush3.bf16.msra.mxu1 %v4737_v31  ;;  %4302 = vmatprep.subr.bf16.mxu0 %v4738_v44 }
  0x23   :  { %450 = vmatmul.mubr.bf16.vlgmr.msra.gmra.mrb[0].mxu0 %v123_v40  ;;  %v4868_v40 = vmov 0.0  }
  0x24   :  { %491 = vmatmul.mubr.bf16.vlgmr.msra.gmra.mrb[0].mxu1 %v125_v43  ;;  %4303 = vmatpush3.bf16.msra.mxu0 %v4739_v45  ;;  %v543_v45 = vlaneseq }
  0x25   :  { %4304 = vmatprep.subr.bf16.mxu0 %v4740_v46  ;;  %531 = vmatprep.mubr.bf16.mxu0 %v128_v58 }
  0x26   :  { %4419 = vmatprep.subr.bf16.mxu1 %v4868_v40  ;;  %4423 = vmatprep.mubr.msk.bf16.mxu1 %vm4869_vm1, %v4868_v40 }
  0x27   :  { %4420 = vmatpush3.bf16.msra.mxu1 %v4754_v39 }
  0x28   :  { %4305 = vmatpush3.bf16.msra.mxu0 %v4741_v47  ;;  %4421 = vmatprep.subr.bf16.mxu1 %v4868_v40 }
  0x29   :  { %4306 = vmatprep.subr.bf16.mxu0 %v4742_v48 }
  0x2b   :  { %4422 = vmatpush3.bf16.msra.mxu1 %v4755_v41 }
  0x2c   :  { %4307 = vmatpush3.bf16.msra.mxu0 %v4743_v49  ;;  %4427 = vmatprep.subr.mxu1 %v4868_v40  ;;  %v5114_v49 = vshrl.u32 %v543_v45, 7 }
  0x2d   :  { %4308 = vmatprep.subr.bf16.mxu0 %v4744_v50 }
  0x2e   :  { %v5117_v50 = vsub.s32 0, %v5114_v49  ;;  %v5135_v0 = vsub.s32 2, %v5114_v49 }
  0x30   :  { %4309 = vmatpush3.bf16.msra.mxu0 %v4745_v51  ;;  %v5122_v51 = vld [vmem:[%s5687_s2 + $0x8] sm:$0xff] }
  0x31   :  { %4310 = vmatprep.subr.bf16.mxu0 %v4746_v52  ;;  %v580_v54 = vrot.slane %v5122_v51, %v5117_v50 }
  0x34   :  { %4311 = vmatpush3.bf16.msra.mxu0 %v4747_v53  ;;  %v5125_v53 = vsub.s32 1, %v5114_v49 }
  0x35   :  { %4312 = vmatprep.subr.bf16.mxu0 %v4748_v55 }
  0x38   :  { %4313 = vmatpush3.bf16.msra.mxu0 %v4749_v57 }
  0x39   :  { %4314 = vmatprep.subr.bf16.mxu0 %v4750_v59  ;;  %v586_v59 = vrot.slane %v5122_v51, %v5125_v53 }
  0x3c   :  { %4315 = vmatpush3.bf16.msra.mxu0 %v4751_v60 }
  0x3d   :  { %4316 = vmatprep.subr.bf16.mxu0 %v4752_v61 }
  0x40   :  { %4317 = vmatpush3.bf16.msra.mxu0 %v4753_v62 }
  0x41   :  { %4467 = vmatprep.subr.mxu0 %v4868_v40 }
  0x43   :  { %532 = vmatmul.mubr.bf16.vlgmr.msra.gmra.mrb[4].mxu0 %v127_v1  ;;  %v597_v1 = vrot.slane %v5122_v51, %v5135_v0 }
  0x44   :  { %4469 = vmatprep.mubr.msk.f32.mxu0 %vm4869_vm1, %v4868_v40 }
  0xf6   :  { %v4274_v2 = vpop.f32.mrb[0].mxu0 }
  0xf7   :  { %v4296_v3 = vpop.f32.mrb[0].mxu1  ;;  %v4275_v4 = vpop.f32.mrb[1].mxu0 }
  0xf8   :  { %v4276_v5 = vadd.f32 %v4275_v4, %v4274_v2  ;;  %v4297_v6 = vpop.f32.mrb[1].mxu1  ;;  %v4277_v7 = vpop.f32.mrb[2].mxu0 }
  0xf9   :  { %v4298_v8 = vadd.f32 %v4297_v6, %v4296_v3  ;;  %v4299_v9 = vpop.f32.mrb[2].mxu1  ;;  %v4278_v10 = vpop.f32.mrb[3].mxu0 }
  0xfa   :  { %v4279_v11 = vadd.f32 %v4278_v10, %v4277_v7  ;;  %v4300_v12 = vpop.f32.mrb[3].mxu1  ;;  %v544_v10 = vand.u32 127, %v543_v45 }
  0xfb   :  { %v493_v13 = vadd.f32 %v4298_v8, %v4276_v5  ;;  %v4301_v14 = vadd.f32 %v4300_v12, %v4299_v9 }
  0xfc   :  { %vm545_vm3 = vcmp.lt.s32.totalorder %v544_v10, 5 }
  0xfd   :  { %v496_v15 = vadd.f32 %v4301_v14, %v4279_v11  ;;  %v4871_v11 = vmov -1e+30  }
  0xfe   :  { %v5159_v12 = vsel %vm545_vm3, 0.0, %v4871_v11 }
 0x116   :  { %v4318_v16 = vpop.f32.mrb[4].mxu0 }
 0x117   :  { %v4319_v17 = vpop.f32.mrb[5].mxu0 }
 0x118   :  { %v4320_v18 = vadd.f32 %v4319_v17, %v4318_v16  ;;  %v4321_v19 = vpop.f32.mrb[6].mxu0 }
 0x119   :  { %v4322_v20 = vpop.f32.mrb[7].mxu0 }
 0x11a   :  { %v534_v22 = vadd.f32 %v4320_v18, %v493_v13  ;;  %v4323_v23 = vadd.f32 %v4322_v20, %v4321_v19 }
 0x11c   :  { %v537_v24 = vadd.f32 %v4323_v23, %v496_v15  ;;  %v5088_v25 = vadd.f32 %v540_v21, %v534_v22 }
 0x11e   :  { %v5090_v26 = vadd.f32 %v540_v21, %v537_v24  ;;  %v550_v27 = vsel %vm549_vm0, %v5088_v25, 0.0 }
 0x11f   :  { %551 = vadd.xlane.f32.xlu0 %v550_v27 }
 0x120   :  { %v553_v28 = vsel %vm549_vm0, %v5090_v26, 0.0 }
 0x123   :  { %554 = vadd.xlane.f32.xlu0 %v553_v28 }
 0x1ac   :  { %v552_v29 = vpop.xlane.xlu0 %551 }
 0x1ad   :  { %v557_v30 = vmul.f32 0.03125, %v552_v29 }
 0x1af   :  { %v559_v31 = vsub.f32 %v5088_v25, %v557_v30 }
 0x1b0   :  { %v555_v32 = vpop.xlane.xlu0 %554 }
 0x1b1   :  { %v558_v33 = vmul.f32 0.03125, %v555_v32  ;;  %v561_v34 = vmul.f32 %v559_v31, %v559_v31 }
 0x1b3   :  { %v560_v35 = vsub.f32 %v5090_v26, %v558_v33  ;;  %v563_v36 = vsel %vm549_vm0, %v561_v34, 0.0 }
 0x1b4   :  { %564 = vadd.xlane.f32.xlu1 %v563_v36 }
 0x1b5   :  { %v562_v37 = vmul.f32 %v560_v35, %v560_v35 }
 0x1b7   :  { %v566_v38 = vsel %vm549_vm0, %v562_v37, 0.0 }
 0x1b8   :  { %567 = vadd.xlane.f32.xlu1 %v566_v38 }
 0x241   :  { %v565_v42 = vpop.xlane.xlu1 %564 }
 0x242   :  { %v569_v43 = vmul.f32 0.03125, %v565_v42 }
 0x244   :  { %v571_v44 = vadd.f32 1e-06, %v569_v43 }
 0x245   :  { %v568_v46 = vpop.xlane.xlu1 %567 }
 0x246   :  { %4776 = vrsqrt.f32 %v571_v44  ;;  %v570_v47 = vmul.f32 0.03125, %v568_v46 }
 0x248   :  { %v572_v48 = vadd.f32 1e-06, %v570_v47 }
 0x24a   :  { %4778 = vrsqrt.f32 %v572_v48 }
 0x250   :  { %v4777_v52 = vpop.eup %4776 }
 0x251   :  { %v575_v55 = vmul.f32 %v4777_v52, %v559_v31 }
 0x253   :  { %v581_v57 = vmul.f32 %v580_v54, %v575_v55 }
 0x254   :  { %v4779_v56 = vpop.eup %4778 }
 0x255   :  { %v576_v58 = vmul.f32 %v4779_v56, %v560_v35  ;;  %v587_v61 = vadd.f32 %v586_v59, %v581_v57 }
 0x257   :  { %v582_v60 = vmul.f32 %v580_v54, %v576_v58 }
 0x259   :  { %v588_v62 = vadd.f32 %v586_v59, %v582_v60 }
 0x25b   :  { %v593_v63 = vpack.c.bf16 %v588_v62, %v587_v61 }
 0x25d   :  { %4424 = vmatmul.mubr.msk.bf16.vlgmr.msra.gmra.mrb[4].mxu1 %vm549_vm0, %v593_v63 }
 0x25e   :  { %4429 = vmatprep.mubr.msk.f32.mxu1 %vm4869_vm1, %v4868_v40 }
 0x330   :  { %v647_v2 = vpop.f32.mrb[4].mxu1 }
 0x331   :  { %v5139_v3 = vadd.f32 %v647_v2, %v597_v1  ;;  %v4425_v4 = vpop.f32.mrb[5].mxu1 }
 0x332   :  { %v650_v5 = vpop.f32.mrb[6].mxu1 }
 0x333   :  { %v5141_v6 = vadd.f32 %v650_v5, %v597_v1  ;;  %655 = vrot.lane.b32.xlu0 %v5139_v3, %s4870_s4  ;;  %v4426_v7 = vpop.f32.mrb[7].mxu1 }
 0x335   :  { %733 = vrot.lane.b32.xlu1 %v5141_v6, %s4870_s4 }
 0x3a5   :  { %v656_v8 = vpop.permute.xlu0 %655 }
 0x3a6   :  { %4428 = vmatpush3.xpose.msk.msra.mxu1 %vm657_vm2, %v656_v8 }
 0x3a7   :  { %4432 = vmatprep.subr.mxu1 %v4868_v40  ;;  %v734_v9 = vpop.permute.xlu1 %733 }
 0x3a9   :  { %4430 = vmatmul.mubr.msk.f32.vlgmr.msra.gmra.mrb[8].mxu1 %vm657_vm2, %v5139_v3 }
 0x3aa   :  { %4433 = vmatpush3.xpose.msk.msra.mxu1 %vm657_vm2, %v734_v9  ;;  %4434 = vmatprep.mubr.msk.f32.mxu1 %vm4869_vm1, %v4868_v40 }
 0x3ab   :  { %4437 = vmatprep.subr.mxu1 %v4868_v40 }
 0x3ad   :  { %4435 = vmatmul.mubr.msk.f32.vlgmr.msra.gmra.mrb[10].mxu1 %vm657_vm2, %v5141_v6 }
 0x3ae   :  { %4439 = vmatprep.mubr.msk.f32.mxu1 %vm4869_vm1, %v4868_v40 }
 0x47c   :  { %v728_v13 = vpop.f32.mrb[8].mxu1 }
 0x47d   :  { %v809_v14 = vmul.f32 0.35355338, %v728_v13  ;;  %v4431_v15 = vpop.f32.mrb[9].mxu1 }
 0x47f   :  { %v811_v16 = vadd.f32 %v809_v14, %v5159_v12 }
 0x480   :  { %v805_v17 = vpop.f32.mrb[10].mxu1 }
 0x481   :  { %v810_v18 = vmul.f32 0.35355338, %v805_v17  ;;  %v4436_v19 = vpop.f32.mrb[11].mxu1  ;;  %v813_v20 = vsel %vm657_vm2, %v811_v16, -inf }
 0x482   :  { %814 = vmax.xlane.f32.xlu1 %v813_v20 }
 0x483   :  { %v812_v21 = vadd.f32 %v810_v18, %v5159_v12 }
 0x485   :  { %v816_v22 = vsel %vm657_vm2, %v812_v21, -inf }
 0x486   :  { %817 = vmax.xlane.f32.xlu0 %v816_v22 }
 0x493   :  { %911 = vrot.lane.b32.xlu1 %v5141_v6, %s4872_s5 }
 0x497   :  { %989 = vrot.lane.b32.xlu1 %v5139_v3, %s4873_s6 }
 0x50f   :  { %v815_v23 = vpop.xlane.xlu1 %814 }
 0x510   :  { %v819_v24 = vsub.f32 %v811_v16, %v815_v23 }
 0x512   :  { %v821_v27 = vmul.f32 1.442695, %v819_v24 }
 0x513   :  { %v818_v28 = vpop.xlane.xlu0 %817  ;;  %v912_v35 = vpop.permute.xlu1 %911 }
 0x514   :  { %4780 = vpow2.f32 %v821_v27  ;;  %v820_v29 = vsub.f32 %v812_v21, %v818_v28 }
 0x516   :  { %v823_v30 = vmul.f32 1.442695, %v820_v29 }
 0x517   :  { %v990_v36 = vpop.permute.xlu1 %989 }
 0x518   :  { %4782 = vpow2.f32 %v823_v30 }
 0x51e   :  { %v4781_v31 = vpop.eup %4780 }
 0x51f   :  { %v825_v32 = vsel %vm657_vm2, %v4781_v31, 0.0 }
 0x520   :  { %826 = vadd.xlane.f32.xlu0 %v825_v32 }
 0x522   :  { %v4783_v33 = vpop.eup %4782 }
 0x523   :  { %v828_v34 = vsel %vm657_vm2, %v4783_v33, 0.0 }
 0x524   :  { %829 = vadd.xlane.f32.xlu1 %v828_v34 }
 0x535   :  { %987 = vrot.lane.b32.xlu1 %v5139_v3, %s4874_s7 }
 0x536   :  { %835 = vrot.lane.b32.xlu0 %v5139_v3, %s4872_s5 }
 0x539   :  { %1065 = vrot.lane.b32.xlu1 %v5141_v6, %s4874_s7 }
 0x53a   :  { %1067 = vrot.lane.b32.xlu0 %v5141_v6, %s4873_s6 }
 0x5ad   :  { %v827_v37 = vpop.xlane.xlu0 %826 }
 0x5ae   :  { %4784 = vrcp.f32 %v827_v37 }
 0x5b1   :  { %v830_v38 = vpop.xlane.xlu1 %829  ;;  %v836_v39 = vpop.permute.xlu0 %835 }
 0x5b2   :  { %4786 = vrcp.f32 %v830_v38  ;;  %4438 = vmatpush3.msra.mxu1 %v836_v39 }
 0x5b3   :  { %4442 = vmatprep.subr.mxu1 %v4868_v40 }
 0x5b5   :  { %v988_v45 = vpop.permute.xlu1 %987  ;;  %v1068_v46 = vpop.permute.xlu0 %1067 }
 0x5b8   :  { %v4785_v41 = vpop.eup %4784 }
 0x5b9   :  { %v832_v42 = vmul.f32 %v4785_v41, %v4781_v31  ;;  %v1066_v47 = vpop.permute.xlu1 %1065 }
 0x5bb   :  { %4440 = vmatmul.mubr.msk.f32.vlgmr.msra.gmra.mrb[12].mxu1 %vm657_vm2, %v832_v42 }
 0x5bc   :  { %v4787_v43 = vpop.eup %4786  ;;  %4443 = vmatpush3.msra.mxu1 %v912_v35  ;;  %4444 = vmatprep.mubr.msk.f32.mxu1 %vm4869_vm1, %v4868_v40 }
 0x5bd   :  { %v834_v44 = vmul.f32 %v4787_v43, %v4783_v33  ;;  %4447 = vmatprep.subr.mxu1 %v4868_v40 }
 0x5bf   :  { %4445 = vmatmul.mubr.msk.f32.vlgmr.msra.gmra.mrb[14].mxu1 %vm657_vm2, %v834_v44 }
 0x5c0   :  { %4449 = vmatprep.mubr.msk.f32.mxu1 %vm4869_vm1, %v4868_v40 }
 0x5c3   :  { %4448 = vmatpush3.xpose.msk.msra.mxu1 %vm657_vm2, %v990_v36 }
 0x5c4   :  { %4452 = vmatprep.subr.mxu1 %v4868_v40 }
 0x5c6   :  { %4450 = vmatmul.mubr.msk.f32.vlgmr.msra.gmra.mrb[16].mxu1 %vm657_vm2, %v988_v45 }
 0x5c7   :  { %4453 = vmatpush3.xpose.msk.msra.mxu1 %vm657_vm2, %v1068_v46  ;;  %4454 = vmatprep.mubr.msk.f32.mxu1 %vm4869_vm1, %v4868_v40 }
 0x5c8   :  { %4457 = vmatprep.subr.mxu1 %v4868_v40 }
 0x5ca   :  { %4455 = vmatmul.mubr.msk.f32.vlgmr.msra.gmra.mrb[18].mxu1 %vm657_vm2, %v1066_v47 }
 0x5cb   :  { %4459 = vmatprep.mubr.msk.f32.mxu1 %vm4869_vm1, %v4868_v40 }
 0x68e   :  { %v5197_v48 = vpop.f32.mrb[12].mxu1 }
 0x68f   :  { %v4441_v52 = vpop.f32.mrb[13].mxu1 }
 0x692   :  { %v5199_v54 = vpop.f32.mrb[14].mxu1 }
 0x693   :  { %v4446_v55 = vpop.f32.mrb[15].mxu1 }
 0x699   :  { %v1061_v56 = vpop.f32.mrb[16].mxu1 }
 0x69a   :  { %v1143_v57 = vmul.f32 0.35355338, %v1061_v56  ;;  %v4451_v58 = vpop.f32.mrb[17].mxu1 }
 0x69c   :  { %v1145_v59 = vadd.f32 %v1143_v57, %v5159_v12 }
 0x69d   :  { %v1139_v60 = vpop.f32.mrb[18].mxu1 }
 0x69e   :  { %v1144_v61 = vmul.f32 0.35355338, %v1139_v60  ;;  %v4456_v62 = vpop.f32.mrb[19].mxu1  ;;  %v1147_v63 = vsel %vm657_vm2, %v1145_v59, -inf }
 0x69f   :  { %1148 = vmax.xlane.f32.xlu0 %v1147_v63 }
 0x6a0   :  { %v1146_v1 = vadd.f32 %v1144_v61, %v5159_v12 }
 0x6a2   :  { %v1150_v2 = vsel %vm657_vm2, %v1146_v1, -inf }
 0x6a3   :  { %1151 = vmax.xlane.f32.xlu1 %v1150_v2 }
 0x6b4   :  { %1245 = vrot.lane.b32.xlu1 %v5141_v6, %s4875_s8 }
 0x6b8   :  { %1323 = vrot.lane.b32.xlu1 %v5139_v3, %s4876_s9 }
 0x6bc   :  { %1401 = vrot.lane.b32.xlu1 %v5141_v6, %s4876_s9 }
 0x6c0   :  { %1399 = vrot.lane.b32.xlu1 %v5141_v6, %s4877_s10 }
 0x72c   :  { %v1149_v4 = vpop.xlane.xlu0 %1148 }
 0x72d   :  { %v1153_v5 = vsub.f32 %v1145_v59, %v1149_v4 }
 0x72f   :  { %v1155_v7 = vmul.f32 1.442695, %v1153_v5 }
 0x730   :  { %v1152_v8 = vpop.xlane.xlu1 %1151 }
 0x731   :  { %4788 = vpow2.f32 %v1155_v7  ;;  %v1154_v14 = vsub.f32 %v1146_v1, %v1152_v8 }
 0x733   :  { %v1157_v15 = vmul.f32 1.442695, %v1154_v14 }
 0x734   :  { %v1246_v9 = vpop.permute.xlu1 %1245 }
 0x735   :  { %4790 = vpow2.f32 %v1157_v15 }
 0x738   :  { %v1324_v10 = vpop.permute.xlu1 %1323 }
 0x739   :  { %4468 = vmatpush3.xpose.msk.msra.mxu0 %vm657_vm2, %v1324_v10 }
 0x73a   :  { %4477 = vmatprep.subr.mxu0 %v4868_v40 }
 0x73b   :  { %v4789_v11 = vpop.eup %4788 }
 0x73c   :  { %v1159_v13 = vsel %vm657_vm2, %v4789_v11, 0.0  ;;  %v1402_v27 = vpop.permute.xlu1 %1401 }
 0x73d   :  { %1160 = vadd.xlane.f32.xlu0 %v1159_v13 }
 0x73f   :  { %v4791_v16 = vpop.eup %4790 }
 0x740   :  { %v1162_v17 = vsel %vm657_vm2, %v4791_v16, 0.0  ;;  %v1400_v29 = vpop.permute.xlu1 %1399 }
 0x753   :  { %1169 = vrot.lane.b32.xlu0 %v5139_v3, %s4875_s8 }
 0x772   :  { %1163 = vadd.xlane.f32.xlu0 %v1162_v17 }
 0x788   :  { %1321 = vrot.lane.b32.xlu0 %v5139_v3, %s4877_s10 }
 0x7ca   :  { %v1161_v18 = vpop.xlane.xlu0 %1160 }
 0x7cb   :  { %4792 = vrcp.f32 %v1161_v18 }
 0x7ce   :  { %v1170_v19 = vpop.permute.xlu0 %1169 }
 0x7cf   :  { %4458 = vmatpush3.msra.mxu1 %v1170_v19 }
 0x7d0   :  { %4462 = vmatprep.subr.mxu1 %v4868_v40 }
 0x7d5   :  { %v4793_v20 = vpop.eup %4792 }
 0x7d6   :  { %v1166_v21 = vmul.f32 %v4793_v20, %v4789_v11 }
 0x7d8   :  { %4460 = vmatmul.mubr.msk.f32.vlgmr.msra.gmra.mrb[20].mxu1 %vm657_vm2, %v1166_v21 }
 0x7d9   :  { %4463 = vmatpush3.msra.mxu1 %v1246_v9  ;;  %4464 = vmatprep.mubr.msk.f32.mxu1 %vm4869_vm1, %v4868_v40 }
 0x7da   :  { %4472 = vmatprep.subr.mxu1 %v4868_v40 }
 0x7ff   :  { %v1164_v22 = vpop.xlane.xlu0 %1163 }
 0x800   :  { %4794 = vrcp.f32 %v1164_v22 }
 0x803   :  { %v1322_v23 = vpop.permute.xlu0 %1321 }
 0x804   :  { %4470 = vmatmul.mubr.msk.f32.vlgmr.msra.gmra.mrb[8].mxu0 %vm657_vm2, %v1322_v23 }
 0x805   :  { %4479 = vmatprep.mubr.msk.f32.mxu0 %vm4869_vm1, %v4868_v40 }
 0x80a   :  { %v4795_v24 = vpop.eup %4794 }
 0x80b   :  { %v1168_v28 = vmul.f32 %v4795_v24, %v4791_v16 }
 0x80d   :  { %4465 = vmatmul.mubr.msk.f32.vlgmr.msra.gmra.mrb[22].mxu1 %vm657_vm2, %v1168_v28 }
 0x80e   :  { %4473 = vmatpush3.xpose.msk.msra.mxu1 %vm657_vm2, %v1402_v27  ;;  %4474 = vmatprep.mubr.msk.f32.mxu1 %vm4869_vm1, %v4868_v40 }
 0x80f   :  { %4482 = vmatprep.subr.mxu1 %v4868_v40 }
 0x811   :  { %4475 = vmatmul.mubr.msk.f32.vlgmr.msra.gmra.mrb[24].mxu1 %vm657_vm2, %v1400_v29 }
 0x812   :  { %4484 = vmatprep.mubr.msk.f32.mxu1 %vm4869_vm1, %v4868_v40 }
 0x8ab   :  { %v5237_v30 = vpop.f32.mrb[20].mxu1 }
 0x8ac   :  { %v4461_v31 = vpop.f32.mrb[21].mxu1 }
 0x8d7   :  { %v1395_v32 = vpop.f32.mrb[8].mxu0 }
 0x8d8   :  { %v1477_v33 = vmul.f32 0.35355338, %v1395_v32  ;;  %v4471_v34 = vpop.f32.mrb[9].mxu0 }
 0x8da   :  { %v1479_v35 = vadd.f32 %v1477_v33, %v5159_v12 }
 0x8dc   :  { %v1481_v36 = vsel %vm657_vm2, %v1479_v35, -inf }
 0x8dd   :  { %1482 = vmax.xlane.f32.xlu0 %v1481_v36 }
 0x8e0   :  { %v5241_v37 = vpop.f32.mrb[22].mxu1 }
 0x8e1   :  { %v4676_v38 = vpack.i.bf16 %v5241_v37, %v5237_v30  ;;  %v4466_v39 = vpop.f32.mrb[23].mxu1 }
 0x8e4   :  { %v1473_v41 = vpop.f32.mrb[24].mxu1 }
 0x8e5   :  { %v1478_v42 = vmul.f32 0.35355338, %v1473_v41  ;;  %v4476_v43 = vpop.f32.mrb[25].mxu1 }
 0x8e7   :  { %v1480_v44 = vadd.f32 %v1478_v42, %v5159_v12 }
 0x8e9   :  { %v1484_v45 = vsel %vm657_vm2, %v1480_v44, -inf }
 0x8ea   :  { %1485 = vmax.xlane.f32.xlu1 %v1484_v45 }
 0x8fb   :  { %1579 = vrot.lane.b32.xlu1 %v5141_v6, %s4878_s11 }
 0x8ff   :  { %1657 = vrot.lane.b32.xlu1 %v5139_v3, %s4879_s12 }
 0x903   :  { %1735 = vrot.lane.b32.xlu1 %v5141_v6, %s4879_s12 }
 0x907   :  { %1733 = vrot.lane.b32.xlu1 %v5141_v6, %s4880_s13 }
 0x96a   :  { %v1483_v46 = vpop.xlane.xlu0 %1482 }
 0x96b   :  { %v1487_v47 = vsub.f32 %v1479_v35, %v1483_v46 }
 0x96d   :  { %v1489_v52 = vmul.f32 1.442695, %v1487_v47 }
 0x96f   :  { %4796 = vpow2.f32 %v1489_v52 }
 0x977   :  { %v1486_v55 = vpop.xlane.xlu1 %1485 }
 0x978   :  { %v1488_v59 = vsub.f32 %v1480_v44, %v1486_v55  ;;  %v4757_v55 = vld [vmem:[%s5685_s1 + $0x198] sm:$0xff]  }
 0x979   :  { %v4797_v56 = vpop.eup %4796 }
 0x97a   :  { %v1493_v57 = vsel %vm657_vm2, %v4797_v56, 0.0  ;;  %v1491_v60 = vmul.f32 1.442695, %v1488_v59 }
 0x97b   :  { %1494 = vadd.xlane.f32.xlu0 %v1493_v57  ;;  %v1580_v58 = vpop.permute.xlu1 %1579 }
 0x97c   :  { %4483 = vmatpush3.msra.mxu1 %v1580_v58  ;;  %4798 = vpow2.f32 %v1491_v60 }
 0x97d   :  { %4492 = vmatprep.subr.mxu1 %v4868_v40 }
 0x97f   :  { %v1658_v5 = vpop.permute.xlu1 %1657 }
 0x983   :  { %v1736_v10 = vpop.permute.xlu1 %1735 }
 0x986   :  { %v4799_v61 = vpop.eup %4798 }
 0x987   :  { %v1496_v62 = vsel %vm657_vm2, %v4799_v61, 0.0  ;;  %v1734_v13 = vpop.permute.xlu1 %1733 }
 0x991   :  { %1503 = vrot.lane.b32.xlu0 %v5139_v3, %s4878_s11 }
 0x9b0   :  { %1497 = vadd.xlane.f32.xlu0 %v1496_v62 }
 0x9c6   :  { %1655 = vrot.lane.b32.xlu0 %v5139_v3, %s4880_s13 }
 0xa08   :  { %v1495_v63 = vpop.xlane.xlu0 %1494 }
 0xa09   :  { %4800 = vrcp.f32 %v1495_v63 }
 0xa0c   :  { %v1504_v1 = vpop.permute.xlu0 %1503 }
 0xa0d   :  { %4478 = vmatpush3.msra.mxu0 %v1504_v1 }
 0xa0e   :  { %4487 = vmatprep.subr.mxu0 %v4868_v40 }
 0xa13   :  { %v4801_v2 = vpop.eup %4800 }
 0xa14   :  { %v1500_v4 = vmul.f32 %v4801_v2, %v4797_v56 }
 0xa16   :  { %4480 = vmatmul.mubr.msk.f32.vlgmr.msra.gmra.mrb[10].mxu0 %vm657_vm2, %v1500_v4 }
 0xa17   :  { %4488 = vmatpush3.xpose.msk.msra.mxu0 %vm657_vm2, %v1658_v5  ;;  %4489 = vmatprep.mubr.msk.f32.mxu0 %vm4869_vm1, %v4868_v40 }
 0xa18   :  { %4497 = vmatprep.subr.mxu0 %v4868_v40 }
 0xa3d   :  { %v1498_v7 = vpop.xlane.xlu0 %1497 }
 0xa3e   :  { %4802 = vrcp.f32 %v1498_v7 }
 0xa41   :  { %v1656_v8 = vpop.permute.xlu0 %1655 }
 0xa42   :  { %4490 = vmatmul.mubr.msk.f32.vlgmr.msra.gmra.mrb[12].mxu0 %vm657_vm2, %v1656_v8 }
 0xa43   :  { %4499 = vmatprep.mubr.msk.f32.mxu0 %vm4869_vm1, %v4868_v40 }
 0xa48   :  { %v4803_v9 = vpop.eup %4802 }
 0xa49   :  { %v1502_v11 = vmul.f32 %v4803_v9, %v4799_v61 }
 0xa4b   :  { %4485 = vmatmul.mubr.msk.f32.vlgmr.msra.gmra.mrb[26].mxu1 %vm657_vm2, %v1502_v11 }
 0xa4c   :  { %4493 = vmatpush3.xpose.msk.msra.mxu1 %vm657_vm2, %v1736_v10  ;;  %4494 = vmatprep.mubr.msk.f32.mxu1 %vm4869_vm1, %v4868_v40 }
 0xa4d   :  { %4502 = vmatprep.subr.mxu1 %v4868_v40 }
 0xa4f   :  { %4495 = vmatmul.mubr.msk.f32.vlgmr.msra.gmra.mrb[28].mxu1 %vm657_vm2, %v1734_v13 }
 0xa50   :  { %4504 = vmatprep.mubr.msk.f32.mxu1 %vm4869_vm1, %v4868_v40 }
 0xae9   :  { %v1575_v14 = vpop.f32.mrb[10].mxu0 }
 0xaea   :  { %v4481_v15 = vpop.f32.mrb[11].mxu0 }
 0xb15   :  { %v1729_v16 = vpop.f32.mrb[12].mxu0 }
 0xb16   :  { %v1811_v17 = vmul.f32 0.35355338, %v1729_v16  ;;  %v4491_v18 = vpop.f32.mrb[13].mxu0 }
 0xb18   :  { %v1813_v19 = vadd.f32 %v1811_v17, %v5159_v12 }
 0xb1a   :  { %v1815_v20 = vsel %vm657_vm2, %v1813_v19, -inf }
 0xb1b   :  { %1816 = vmax.xlane.f32.xlu0 %v1815_v20 }
 0xb1e   :  { %v1651_v21 = vpop.f32.mrb[26].mxu1 }
 0xb1f   :  { %v4681_v22 = vpack.i.bf16 %v1651_v21, %v1575_v14  ;;  %v4486_v23 = vpop.f32.mrb[27].mxu1 }
 0xb22   :  { %v1807_v24 = vpop.f32.mrb[28].mxu1 }
 0xb23   :  { %v1812_v27 = vmul.f32 0.35355338, %v1807_v24  ;;  %v4496_v28 = vpop.f32.mrb[29].mxu1 }
 0xb25   :  { %v1814_v29 = vadd.f32 %v1812_v27, %v5159_v12 }
 0xb27   :  { %v1818_v31 = vsel %vm657_vm2, %v1814_v29, -inf }
 0xb28   :  { %1819 = vmax.xlane.f32.xlu1 %v1818_v31 }
 0xb39   :  { %1913 = vrot.lane.b32.xlu1 %v5141_v6, %s4881_s14 }
 0xb3d   :  { %4677 = vrot.lane.b32.xlu1 %v4676_v38, %s4882_s15 }
 0xb41   :  { %4682 = vrot.lane.b32.xlu1 %v4681_v22, %s4883_s16 }
 0xba8   :  { %v1817_v32 = vpop.xlane.xlu0 %1816 }
 0xba9   :  { %v1821_v33 = vsub.f32 %v1813_v19, %v1817_v32 }
 0xbab   :  { %v1823_v34 = vmul.f32 1.442695, %v1821_v33 }
 0xbad   :  { %4804 = vpow2.f32 %v1823_v34 }
 0xbb5   :  { %v1820_v35 = vpop.xlane.xlu1 %1819 }
 0xbb6   :  { %v1822_v36 = vsub.f32 %v1814_v29, %v1820_v35 }
 0xbb7   :  { %v4805_v39 = vpop.eup %4804 }
 0xbb8   :  { %v1825_v41 = vmul.f32 1.442695, %v1822_v36  ;;  %v1827_v42 = vsel %vm657_vm2, %v4805_v39, 0.0 }
 0xbb9   :  { %1828 = vadd.xlane.f32.xlu0 %v1827_v42  ;;  %v1914_v6 = vpop.permute.xlu1 %1913  ;;  %v4759_v42 = vld [vmem:[%s5685_s1 + $0x1a8] sm:$0xff]  }
 0xbba   :  { %4806 = vpow2.f32 %v1825_v41  ;;  %4503 = vmatpush3.msra.mxu1 %v1914_v6  ;;  %v4758_v41 = vld [vmem:[%s5685_s1 + $0x1a0] sm:$0xff]  }
 0xbbb   :  { %4515 = vmatprep.subr.bf16.mxu1 %v4868_v40 }
 0xbbd   :  { %v4678_v61 = vpop.permute.xlu1 %4677 }
 0xbbe   :  { %v4680_v63 = vunpack.i.h.bf16 %v4678_v61  ;;  %v4679_v1 = vunpack.i.l.bf16 %v4678_v61 }
 0xbc0   :  { %v2014_v7 = vsel %vm657_vm2, %v5199_v54, %v4680_v63  ;;  %v2013_v8 = vsel %vm657_vm2, %v5197_v48, %v4679_v1  ;;  %v2028_v54 = vsub.s32 3, %v5114_v49  ;;  %v4760_v63 = vld [vmem:[%s5685_s1 + $0x1b0] sm:$0xff]   ;;  %v4761_v1 = vld [vmem:[%s5685_s1 + $0x1b8] sm:$0xff]  }
 0xbc1   :  { %v4683_v62 = vpop.permute.xlu1 %4682 }
 0xbc2   :  { %v4685_v2 = vunpack.i.h.bf16 %v4683_v62  ;;  %v4684_v4 = vunpack.i.l.bf16 %v4683_v62  ;;  %v2029_v48 = vrot.slane %v5122_v51, %v2028_v54 }
 0xbc4   :  { %v4807_v30 = vpop.eup %4806  ;;  %v2016_v11 = vsel %vm2015_vm4, %v2013_v8, %v4684_v4  ;;  %v2017_v13 = vsel %vm2015_vm4, %v2014_v7, %v4685_v2  ;;  %v4762_v2 = vld [vmem:[%s5685_s1 + $0x1c0] sm:$0xff]   ;;  %v4763_v4 = vld [vmem:[%s5685_s1 + $0x1c8] sm:$0xff]  }
 0xbc5   :  { %v1830_v37 = vsel %vm657_vm2, %v4807_v30, 0.0 }
 0xbc6   :  { %1831 = vadd.xlane.f32.xlu0 %v1830_v37 }
 0xbdc   :  { %1837 = vrot.lane.b32.xlu0 %v5139_v3, %s4881_s14  ;;  %v4756_v3 = vld [vmem:[%s5685_s1 + $0x190] sm:$0xff]  }
 0xc46   :  { %v1829_v38 = vpop.xlane.xlu0 %1828 }
 0xc47   :  { %4808 = vrcp.f32 %v1829_v38 }
 0xc51   :  { %v4809_v44 = vpop.eup %4808 }
 0xc52   :  { %v1834_v45 = vmul.f32 %v4809_v44, %v4805_v39 }
 0xc53   :  { %v1832_v43 = vpop.xlane.xlu0 %1831 }
 0xc54   :  { %4810 = vrcp.f32 %v1832_v43 }
 0xc57   :  { %v1838_v46 = vpop.permute.xlu0 %1837 }
 0xc58   :  { %4498 = vmatpush3.msra.mxu0 %v1838_v46 }
 0xc59   :  { %4500 = vmatmul.mubr.msk.f32.vlgmr.msra.gmra.mrb[14].mxu0 %vm657_vm2, %v1834_v45  ;;  %4507 = vmatprep.subr.bf16.mxu0 %v4868_v40  ;;  %v2116_v45 = vsub.s32 4, %v5114_v49 }
 0xc5a   :  { %4511 = vmatprep.mubr.msk.bf16.mxu0 %vm4869_vm1, %v4868_v40  ;;  %4508 = vmatpush3.bf16.msra.mxu0 %v4756_v3  ;;  %v2122_v3 = vsub.s32 5, %v5114_v49 }
 0xc5b   :  { %4509 = vmatprep.subr.bf16.mxu0 %v4868_v40 }
 0xc5e   :  { %v4811_v47 = vpop.eup %4810  ;;  %4510 = vmatpush3.bf16.msra.mxu0 %v4757_v55 }
 0xc5f   :  { %v1836_v52 = vmul.f32 %v4811_v47, %v4807_v30  ;;  %4523 = vmatprep.subr.bf16.mxu0 %v4868_v40  ;;  %v2117_v47 = vrot.slane %v5122_v51, %v2116_v45 }
 0xc61   :  { %4505 = vmatmul.mubr.msk.f32.vlgmr.msra.gmra.mrb[30].mxu1 %vm657_vm2, %v1836_v52 }
 0xc62   :  { %4519 = vmatprep.mubr.msk.bf16.mxu1 %vm4869_vm1, %v4868_v40  ;;  %4516 = vmatpush3.bf16.msra.mxu1 %v4758_v41 }
 0xc63   :  { %4517 = vmatprep.subr.bf16.mxu1 %v4868_v40 }
 0xc66   :  { %4518 = vmatpush3.bf16.msra.mxu1 %v4759_v42 }
 0xc67   :  { %4535 = vmatprep.subr.bf16.mxu1 %v4868_v40 }
 0xd2c   :  { %v1909_v56 = vpop.f32.mrb[14].mxu0 }
 0xd2d   :  { %v4501_v57 = vpop.f32.mrb[15].mxu0 }
 0xd34   :  { %v1985_v58 = vpop.f32.mrb[30].mxu1 }
 0xd35   :  { %v4686_v59 = vpack.i.bf16 %v1985_v58, %v1909_v56  ;;  %v4506_v60 = vpop.f32.mrb[31].mxu1  ;;  %v2123_v58 = vrot.slane %v5122_v51, %v2122_v3 }
 0xd37   :  { %4687 = vrot.lane.b32.xlu0 %v4686_v59, %s4884_s21 }
 0xda9   :  { %v4688_v5 = vpop.permute.xlu0 %4687 }
 0xdaa   :  { %v4690_v9 = vunpack.i.h.bf16 %v4688_v5  ;;  %v4689_v10 = vunpack.i.l.bf16 %v4688_v5  ;;  %v2133_v5 = vsub.s32 6, %v5114_v49 }
 0xdac   :  { %v2020_v14 = vsel %vm2018_vm5, %v2017_v13, %v4690_v9  ;;  %v2019_v15 = vsel %vm2018_vm5, %v2016_v11, %v4689_v10  ;;  %v2134_v7 = vrot.slane %v5122_v51, %v2133_v5 }
 0xdad   :  { %v2025_v16 = vpack.c.bf16 %v2020_v14, %v2019_v15 }
 0xdaf   :  { %4512 = vmatmul.mubr.msk.bf16.vlgmr.msra.gmra.mrb[16].mxu0 %vm549_vm0, %v2025_v16 }
 0xdb0   :  { %4531 = vmatprep.mubr.msk.bf16.mxu0 %vm4869_vm1, %v4868_v40  ;;  %4524 = vmatpush3.bf16.msra.mxu0 %v4760_v63 }
 0xdb1   :  { %4525 = vmatprep.subr.bf16.mxu0 %v4868_v40 }
 0xdb4   :  { %4526 = vmatpush3.bf16.msra.mxu0 %v4761_v1 }
 0xdb5   :  { %4527 = vmatprep.subr.bf16.mxu0 %v4868_v40 }
 0xdb8   :  { %4528 = vmatpush3.bf16.msra.mxu0 %v4762_v2 }
 0xdb9   :  { %4529 = vmatprep.subr.bf16.mxu0 %v4868_v40 }
 0xdbc   :  { %4530 = vmatpush3.bf16.msra.mxu0 %v4763_v4 }
 0xdbd   :  { %4553 = vmatprep.subr.mxu0 %v4868_v40 }
 0xe82   :  { %v2079_v17 = vpop.f32.mrb[16].mxu0 }
 0xe83   :  { %v2080_v18 = vadd.f32 %v2079_v17, %v2029_v48  ;;  %v4513_v19 = vpop.f32.mrb[17].mxu0 }
 0xe84   :  { %v2082_v20 = vpop.f32.mrb[18].mxu0 }
 0xe85   :  { %v5327_v21 = vadd.f32 %v2080_v18, %v5088_v25  ;;  %v2083_v22 = vadd.f32 %v2082_v20, %v2029_v48  ;;  %v4514_v23 = vpop.f32.mrb[19].mxu0 }
 0xe87   :  { %v5330_v24 = vadd.f32 %v2083_v22, %v5090_v26  ;;  %v2088_v27 = vsel %vm549_vm0, %v5327_v21, 0.0 }
 0xe88   :  { %2089 = vadd.xlane.f32.xlu1 %v2088_v27 }
 0xe89   :  { %v2091_v28 = vsel %vm549_vm0, %v5330_v24, 0.0 }
 0xe8a   :  { %2092 = vadd.xlane.f32.xlu0 %v2091_v28 }
 0xf15   :  { %v2090_v29 = vpop.xlane.xlu1 %2089 }
 0xf16   :  { %v2094_v31 = vmul.f32 0.03125, %v2090_v29  ;;  %v2212_v29 = vsub.s32 7, %v5114_v49 }
 0xf17   :  { %v2093_v32 = vpop.xlane.xlu0 %2092 }
 0xf18   :  { %v2096_v33 = vsub.f32 %v5327_v21, %v2094_v31  ;;  %v2095_v25 = vmul.f32 0.03125, %v2093_v32  ;;  %v2213_v31 = vrot.slane %v5122_v51, %v2212_v29 }
 0xf1a   :  { %v2097_v34 = vsub.f32 %v5330_v24, %v2095_v25  ;;  %v2098_v35 = vmul.f32 %v2096_v33, %v2096_v33 }
 0xf1c   :  { %v2100_v26 = vsel %vm549_vm0, %v2098_v35, 0.0  ;;  %v2099_v36 = vmul.f32 %v2097_v34, %v2097_v34 }
 0xf1d   :  { %2101 = vadd.xlane.f32.xlu0 %v2100_v26 }
 0xf1e   :  { %v2103_v39 = vsel %vm549_vm0, %v2099_v36, 0.0 }
 0xf21   :  { %2104 = vadd.xlane.f32.xlu0 %v2103_v39 }
 0xfaa   :  { %v2102_v6 = vpop.xlane.xlu0 %2101 }
 0xfab   :  { %v2106_v30 = vmul.f32 0.03125, %v2102_v6 }
 0xfad   :  { %v2108_v37 = vadd.f32 1e-06, %v2106_v30 }
 0xfae   :  { %v2105_v38 = vpop.xlane.xlu0 %2104 }
 0xfaf   :  { %4812 = vrsqrt.f32 %v2108_v37  ;;  %v2107_v43 = vmul.f32 0.03125, %v2105_v38 }
 0xfb1   :  { %v2109_v44 = vadd.f32 1e-06, %v2107_v43 }
 0xfb3   :  { %4814 = vrsqrt.f32 %v2109_v44 }
 0xfb9   :  { %v4813_v46 = vpop.eup %4812 }
 0xfba   :  { %v2112_v52 = vmul.f32 %v4813_v46, %v2096_v33 }
 0xfbc   :  { %v2118_v56 = vmul.f32 %v2117_v47, %v2112_v52  ;;  %v4765_v52 = vld [vmem:[%s5685_s1 + $0x1d8] sm:$0xff]  }
 0xfbd   :  { %v4815_v55 = vpop.eup %4814 }
 0xfbe   :  { %v2113_v57 = vmul.f32 %v4815_v55, %v2097_v34  ;;  %v2124_v60 = vadd.f32 %v2123_v58, %v2118_v56 }
 0xfc0   :  { %v2119_v59 = vmul.f32 %v2117_v47, %v2113_v57  ;;  %v4764_v47 = vld [vmem:[%s5685_s1 + $0x1d0] sm:$0xff]  }
 0xfc2   :  { %v2125_v61 = vadd.f32 %v2123_v58, %v2119_v59 }
 0xfc4   :  { %v2130_v62 = vpack.c.bf16 %v2125_v61, %v2124_v60  ;;  %v5411_v61 = vld [vmem:[%s5687_s2 + $0x10] sm:$0xff] }
 0xfc6   :  { %4520 = vmatmul.mubr.msk.bf16.vlgmr.msra.gmra.mrb[32].mxu1 %vm549_vm0, %v2130_v62  ;;  %v2316_v62 = vrot.slane %v5411_v61, %v5117_v50 }
 0xfc7   :  { %4539 = vmatprep.mubr.msk.bf16.mxu1 %vm4869_vm1, %v4868_v40  ;;  %4536 = vmatpush3.bf16.msra.mxu1 %v4764_v47 }
 0xfc8   :  { %4537 = vmatprep.subr.bf16.mxu1 %v4868_v40 }
 0xfcb   :  { %4538 = vmatpush3.bf16.msra.mxu1 %v4765_v52 }
 0xfcc   :  { %4543 = vmatprep.subr.mxu1 %v4868_v40 }
0x1099   :  { %v2184_v8 = vpop.f32.mrb[32].mxu1 }
0x109a   :  { %v2185_v9 = vadd.f32 %v2184_v8, %v2134_v7  ;;  %v4521_v10 = vpop.f32.mrb[33].mxu1  ;;  %v2322_v8 = vrot.slane %v5411_v61, %v5125_v53 }
0x109b   :  { %v2187_v11 = vpop.f32.mrb[34].mxu1 }
0x109c   :  { %v2193_v13 = vmul.f32 0.70710677, %v2185_v9  ;;  %v2188_v14 = vadd.f32 %v2187_v11, %v2134_v7  ;;  %v4522_v15 = vpop.f32.mrb[35].mxu1  ;;  %v2191_v19 = vmul.f32 0.5, %v2185_v9 }
0x109e   :  { %4816 = verf.f32 %v2193_v13  ;;  %v2194_v16 = vmul.f32 0.70710677, %v2188_v14  ;;  %v2192_v20 = vmul.f32 0.5, %v2188_v14  ;;  %v2333_v14 = vrot.slane %v5411_v61, %v5135_v0 }
0x10a0   :  { %4818 = verf.f32 %v2194_v16 }
0x10a8   :  { %v4817_v48 = vpop.eup %4816 }
0x10a9   :  { %v2197_v17 = vadd.f32 1.0, %v4817_v48 }
0x10aa   :  { %v4819_v18 = vpop.eup %4818 }
0x10ab   :  { %v2198_v22 = vadd.f32 1.0, %v4819_v18  ;;  %v2199_v23 = vmul.f32 %v2197_v17, %v2191_v19 }
0x10ad   :  { %v2200_v27 = vmul.f32 %v2198_v22, %v2192_v20 }
0x10af   :  { %v2209_v28 = vpack.c.bf16 %v2200_v27, %v2199_v23 }
0x10b1   :  { %4532 = vmatmul.mubr.msk.bf16.vlgmr.msra.gmra.mrb[20].mxu0 %vm2238_vm6, %v2209_v28 }
0x10b2   :  { %4555 = vmatprep.mubr.msk.f32.mxu0 %vm4869_vm1, %v4868_v40 }
0x1184   :  { %v2276_v32 = vpop.f32.mrb[20].mxu0 }
0x1185   :  { %v2277_v33 = vadd.f32 %v2276_v32, %v2213_v31  ;;  %v4533_v25 = vpop.f32.mrb[21].mxu0 }
0x1186   :  { %v2279_v34 = vpop.f32.mrb[22].mxu0 }
0x1187   :  { %v5387_v35 = vadd.f32 %v2277_v33, %v5327_v21  ;;  %v2280_v26 = vadd.f32 %v2279_v34, %v2213_v31  ;;  %v4534_v36 = vpop.f32.mrb[23].mxu0 }
0x1189   :  { %v5390_v39 = vadd.f32 %v2280_v26, %v5330_v24  ;;  %v2287_v41 = vsel %vm549_vm0, %v5387_v35, 0.0 }
0x118a   :  { %2288 = vadd.xlane.f32.xlu1 %v2287_v41 }
0x118b   :  { %v2290_v42 = vsel %vm549_vm0, %v5390_v39, 0.0 }
0x118c   :  { %2291 = vadd.xlane.f32.xlu0 %v2290_v42 }
0x1217   :  { %v2289_v51 = vpop.xlane.xlu1 %2288 }
0x1218   :  { %v2293_v6 = vmul.f32 0.03125, %v2289_v51 }
0x1219   :  { %v2292_v30 = vpop.xlane.xlu0 %2291 }
0x121a   :  { %v2295_v37 = vsub.f32 %v5387_v35, %v2293_v6  ;;  %v2294_v21 = vmul.f32 0.03125, %v2292_v30 }
0x121c   :  { %v2296_v38 = vsub.f32 %v5390_v39, %v2294_v21  ;;  %v2297_v43 = vmul.f32 %v2295_v37, %v2295_v37 }
0x121e   :  { %v2299_v24 = vsel %vm549_vm0, %v2297_v43, 0.0  ;;  %v2298_v44 = vmul.f32 %v2296_v38, %v2296_v38 }
0x121f   :  { %2300 = vadd.xlane.f32.xlu1 %v2299_v24 }
0x1220   :  { %v2302_v46 = vsel %vm549_vm0, %v2298_v44, 0.0 }
0x1221   :  { %2303 = vadd.xlane.f32.xlu0 %v2302_v46 }
0x12ac   :  { %v2301_v55 = vpop.xlane.xlu1 %2300 }
0x12ad   :  { %v2305_v56 = vmul.f32 0.03125, %v2301_v55 }
0x12ae   :  { %v2304_v57 = vpop.xlane.xlu0 %2303 }
0x12af   :  { %v2307_v58 = vadd.f32 1e-06, %v2305_v56  ;;  %v2306_v59 = vmul.f32 0.03125, %v2304_v57 }
0x12b1   :  { %4820 = vrsqrt.f32 %v2307_v58  ;;  %v2308_v60 = vadd.f32 1e-06, %v2306_v59 }
0x12b3   :  { %4822 = vrsqrt.f32 %v2308_v60 }
0x12bb   :  { %v4821_v63 = vpop.eup %4820 }
0x12bc   :  { %v2311_v1 = vmul.f32 %v4821_v63, %v2295_v37 }
0x12bd   :  { %v4823_v2 = vpop.eup %4822 }
0x12be   :  { %v2317_v4 = vmul.f32 %v2316_v62, %v2311_v1  ;;  %v2312_v7 = vmul.f32 %v4823_v2, %v2296_v38 }
0x12c0   :  { %v2318_v9 = vmul.f32 %v2316_v62, %v2312_v7  ;;  %v2323_v10 = vadd.f32 %v2322_v8, %v2317_v4 }
0x12c2   :  { %v2324_v11 = vadd.f32 %v2322_v8, %v2318_v9 }
0x12c4   :  { %v2329_v13 = vpack.c.bf16 %v2324_v11, %v2323_v10 }
0x12c6   :  { %4540 = vmatmul.mubr.msk.bf16.vlgmr.msra.gmra.mrb[36].mxu1 %vm549_vm0, %v2329_v13 }
0x12c7   :  { %4545 = vmatprep.mubr.msk.f32.mxu1 %vm4869_vm1, %v4868_v40 }
0x1399   :  { %v2383_v15 = vpop.f32.mrb[36].mxu1 }
0x139a   :  { %v5422_v16 = vadd.f32 %v2383_v15, %v2333_v14  ;;  %v4541_v48 = vpop.f32.mrb[37].mxu1 }
0x139b   :  { %v2386_v17 = vpop.f32.mrb[38].mxu1 }
0x139c   :  { %v5424_v18 = vadd.f32 %v2386_v17, %v2333_v14  ;;  %2391 = vrot.lane.b32.xlu1 %v5422_v16, %s4870_s4  ;;  %v4542_v19 = vpop.f32.mrb[39].mxu1 }
0x139e   :  { %2468 = vrot.lane.b32.xlu0 %v5424_v18, %s4870_s4 }
0x140e   :  { %v2392_v20 = vpop.permute.xlu1 %2391 }
0x140f   :  { %4544 = vmatpush3.xpose.msk.msra.mxu1 %vm657_vm2, %v2392_v20 }
0x1410   :  { %4548 = vmatprep.subr.mxu1 %v4868_v40  ;;  %v2469_v22 = vpop.permute.xlu0 %2468 }
0x1412   :  { %4546 = vmatmul.mubr.msk.f32.vlgmr.msra.gmra.mrb[40].mxu1 %vm657_vm2, %v5422_v16 }
0x1413   :  { %4549 = vmatpush3.xpose.msk.msra.mxu1 %vm657_vm2, %v2469_v22  ;;  %4550 = vmatprep.mubr.msk.f32.mxu1 %vm4869_vm1, %v4868_v40 }
0x1414   :  { %4558 = vmatprep.subr.mxu1 %v4868_v40 }
0x1416   :  { %4551 = vmatmul.mubr.msk.f32.vlgmr.msra.gmra.mrb[42].mxu1 %vm657_vm2, %v5424_v18 }
0x1417   :  { %4560 = vmatprep.mubr.msk.f32.mxu1 %vm4869_vm1, %v4868_v40 }
0x14e5   :  { %v2463_v23 = vpop.f32.mrb[40].mxu1 }
0x14e6   :  { %v2544_v27 = vmul.f32 0.35355338, %v2463_v23  ;;  %v4547_v28 = vpop.f32.mrb[41].mxu1 }
0x14e8   :  { %v2546_v31 = vadd.f32 %v2544_v27, %v5159_v12 }
0x14e9   :  { %v2540_v32 = vpop.f32.mrb[42].mxu1 }
0x14ea   :  { %v2545_v33 = vmul.f32 0.35355338, %v2540_v32  ;;  %v4552_v25 = vpop.f32.mrb[43].mxu1  ;;  %v2548_v34 = vsel %vm657_vm2, %v2546_v31, -inf }
0x14eb   :  { %2549 = vmax.xlane.f32.xlu1 %v2548_v34 }
0x14ec   :  { %v2547_v26 = vadd.f32 %v2545_v33, %v5159_v12 }
0x14ee   :  { %v2551_v36 = vsel %vm657_vm2, %v2547_v26, -inf }
0x14ef   :  { %2552 = vmax.xlane.f32.xlu0 %v2551_v36 }
0x14fc   :  { %2570 = vrot.lane.b32.xlu1 %v5422_v16, %s4872_s5 }
0x1500   :  { %2724 = vrot.lane.b32.xlu1 %v5422_v16, %s4873_s6 }
0x1504   :  { %2802 = vrot.lane.b32.xlu1 %v5424_v18, %s4873_s6 }
0x1505   :  { %2646 = vrot.lane.b32.xlu0 %v5424_v18, %s4872_s5 }
0x1578   :  { %v2550_v41 = vpop.xlane.xlu1 %2549 }
0x1579   :  { %v2554_v42 = vsub.f32 %v2546_v31, %v2550_v41 }
0x157b   :  { %v2556_v51 = vmul.f32 1.442695, %v2554_v42 }
0x157c   :  { %v2571_v6 = vpop.permute.xlu1 %2570  ;;  %v2553_v30 = vpop.xlane.xlu0 %2552 }
0x157d   :  { %4824 = vpow2.f32 %v2556_v51  ;;  %v2555_v37 = vsub.f32 %v2547_v26, %v2553_v30  ;;  %4554 = vmatpush3.msra.mxu0 %v2571_v6 }
0x157e   :  { %4563 = vmatprep.subr.mxu0 %v4868_v40 }
0x157f   :  { %v2558_v21 = vmul.f32 1.442695, %v2555_v37 }
0x1580   :  { %v2647_v38 = vpop.permute.xlu0 %2646  ;;  %v2725_v47 = vpop.permute.xlu1 %2724 }
0x1581   :  { %4826 = vpow2.f32 %v2558_v21  ;;  %4559 = vmatpush3.msra.mxu1 %v2647_v38 }
0x1582   :  { %4568 = vmatprep.subr.mxu1 %v4868_v40 }
0x1584   :  { %v2803_v52 = vpop.permute.xlu1 %2802 }
0x1587   :  { %v4825_v43 = vpop.eup %4824 }
0x1588   :  { %v2560_v24 = vsel %vm657_vm2, %v4825_v43, 0.0 }
0x1589   :  { %2561 = vadd.xlane.f32.xlu1 %v2560_v24 }
0x158b   :  { %v4827_v44 = vpop.eup %4826 }
0x158c   :  { %v2563_v46 = vsel %vm657_vm2, %v4827_v44, 0.0 }
0x158d   :  { %2564 = vadd.xlane.f32.xlu0 %v2563_v46 }
0x159a   :  { %2722 = vrot.lane.b32.xlu1 %v5422_v16, %s4874_s7 }
0x15a3   :  { %2800 = vrot.lane.b32.xlu0 %v5424_v18, %s4874_s7 }
0x1616   :  { %v2562_v55 = vpop.xlane.xlu1 %2561 }
0x1617   :  { %4828 = vrcp.f32 %v2562_v55 }
0x161a   :  { %v2565_v56 = vpop.xlane.xlu0 %2564  ;;  %v2723_v62 = vpop.permute.xlu1 %2722 }
0x161b   :  { %4830 = vrcp.f32 %v2565_v56 }
0x161e   :  { %v2801_v63 = vpop.permute.xlu0 %2800 }
0x1621   :  { %v4829_v57 = vpop.eup %4828 }
0x1622   :  { %v2567_v58 = vmul.f32 %v4829_v57, %v4825_v43 }
0x1624   :  { %4556 = vmatmul.mubr.msk.f32.vlgmr.msra.gmra.mrb[24].mxu0 %vm657_vm2, %v2567_v58 }
0x1625   :  { %v4831_v59 = vpop.eup %4830  ;;  %4564 = vmatpush3.xpose.msk.msra.mxu0 %vm657_vm2, %v2725_v47  ;;  %4565 = vmatprep.mubr.msk.f32.mxu0 %vm4869_vm1, %v4868_v40 }
0x1626   :  { %v2569_v60 = vmul.f32 %v4831_v59, %v4827_v44  ;;  %4573 = vmatprep.subr.mxu0 %v4868_v40 }
0x1628   :  { %4561 = vmatmul.mubr.msk.f32.vlgmr.msra.gmra.mrb[44].mxu1 %vm657_vm2, %v2569_v60  ;;  %4566 = vmatmul.mubr.msk.f32.vlgmr.msra.gmra.mrb[26].mxu0 %vm657_vm2, %v2723_v62 }
0x1629   :  { %4569 = vmatpush3.xpose.msk.msra.mxu1 %vm657_vm2, %v2803_v52  ;;  %4570 = vmatprep.mubr.msk.f32.mxu1 %vm4869_vm1, %v4868_v40 }
0x162a   :  { %4578 = vmatprep.subr.mxu1 %v4868_v40  ;;  %4575 = vmatprep.mubr.msk.f32.mxu0 %vm4869_vm1, %v4868_v40 }
0x162c   :  { %4571 = vmatmul.mubr.msk.f32.vlgmr.msra.gmra.mrb[46].mxu1 %vm657_vm2, %v2801_v63 }
0x162d   :  { %4580 = vmatprep.mubr.msk.f32.mxu1 %vm4869_vm1, %v4868_v40 }
0x16f7   :  { %v5478_v1 = vpop.f32.mrb[24].mxu0 }
0x16f8   :  { %v4557_v2 = vpop.f32.mrb[25].mxu0 }
0x16fb   :  { %v5480_v4 = vpop.f32.mrb[44].mxu1  ;;  %v2796_v7 = vpop.f32.mrb[26].mxu0 }
0x16fc   :  { %v2878_v8 = vmul.f32 0.35355338, %v2796_v7  ;;  %v4562_v9 = vpop.f32.mrb[45].mxu1  ;;  %v4567_v10 = vpop.f32.mrb[27].mxu0 }
0x16fe   :  { %v2880_v11 = vadd.f32 %v2878_v8, %v5159_v12 }
0x16ff   :  { %v2874_v13 = vpop.f32.mrb[46].mxu1 }
0x1700   :  { %v2879_v14 = vmul.f32 0.35355338, %v2874_v13  ;;  %v4572_v15 = vpop.f32.mrb[47].mxu1  ;;  %v2882_v48 = vsel %vm657_vm2, %v2880_v11, -inf }
0x1701   :  { %2883 = vmax.xlane.f32.xlu1 %v2882_v48 }
0x1702   :  { %v2881_v17 = vadd.f32 %v2879_v14, %v5159_v12 }
0x1704   :  { %v2885_v19 = vsel %vm657_vm2, %v2881_v17, -inf }
0x1705   :  { %2886 = vmax.xlane.f32.xlu0 %v2885_v19 }
0x1712   :  { %2904 = vrot.lane.b32.xlu1 %v5422_v16, %s4875_s8 }
0x1716   :  { %3058 = vrot.lane.b32.xlu1 %v5422_v16, %s4876_s9 }
0x171a   :  { %3136 = vrot.lane.b32.xlu1 %v5424_v18, %s4876_s9 }
0x171b   :  { %2980 = vrot.lane.b32.xlu0 %v5424_v18, %s4875_s8 }
0x171e   :  { %3056 = vrot.lane.b32.xlu1 %v5422_v16, %s4877_s10 }
0x178e   :  { %v2884_v20 = vpop.xlane.xlu1 %2883 }
0x178f   :  { %v2888_v22 = vsub.f32 %v2880_v11, %v2884_v20 }
0x1791   :  { %v2890_v23 = vmul.f32 1.442695, %v2888_v22 }
0x1792   :  { %v2905_v27 = vpop.permute.xlu1 %2904  ;;  %v2887_v28 = vpop.xlane.xlu0 %2886 }
0x1793   :  { %4832 = vpow2.f32 %v2890_v23  ;;  %v2889_v31 = vsub.f32 %v2881_v17, %v2887_v28  ;;  %4574 = vmatpush3.msra.mxu0 %v2905_v27 }
0x1794   :  { %4583 = vmatprep.subr.mxu0 %v4868_v40 }
0x1795   :  { %v2892_v32 = vmul.f32 1.442695, %v2889_v31 }
0x1796   :  { %v2981_v33 = vpop.permute.xlu0 %2980  ;;  %v3059_v51 = vpop.permute.xlu1 %3058 }
0x1797   :  { %4834 = vpow2.f32 %v2892_v32  ;;  %4579 = vmatpush3.msra.mxu1 %v2981_v33 }
0x1798   :  { %4588 = vmatprep.subr.mxu1 %v4868_v40 }
0x179a   :  { %v3137_v30 = vpop.permute.xlu1 %3136 }
0x179d   :  { %v4833_v25 = vpop.eup %4832 }
0x179e   :  { %v2894_v34 = vsel %vm657_vm2, %v4833_v25, 0.0  ;;  %v3057_v43 = vpop.permute.xlu1 %3056 }
0x179f   :  { %2895 = vadd.xlane.f32.xlu0 %v2894_v34 }
0x17a1   :  { %v4835_v26 = vpop.eup %4834 }
0x17a2   :  { %v2897_v36 = vsel %vm657_vm2, %v4835_v26, 0.0 }
0x17a3   :  { %2898 = vadd.xlane.f32.xlu0 %v2897_v36 }
0x17b9   :  { %3134 = vrot.lane.b32.xlu0 %v5424_v18, %s4877_s10 }
0x182c   :  { %v2896_v41 = vpop.xlane.xlu0 %2895 }
0x182d   :  { %4836 = vrcp.f32 %v2896_v41 }
0x1830   :  { %v2899_v42 = vpop.xlane.xlu0 %2898 }
0x1831   :  { %4838 = vrcp.f32 %v2899_v42 }
0x1834   :  { %v3135_v24 = vpop.permute.xlu0 %3134 }
0x1837   :  { %v4837_v6 = vpop.eup %4836 }
0x1838   :  { %v2901_v37 = vmul.f32 %v4837_v6, %v4833_v25 }
0x183a   :  { %4576 = vmatmul.mubr.msk.f32.vlgmr.msra.gmra.mrb[28].mxu0 %vm657_vm2, %v2901_v37 }
0x183b   :  { %v4839_v21 = vpop.eup %4838  ;;  %4584 = vmatpush3.xpose.msk.msra.mxu0 %vm657_vm2, %v3059_v51  ;;  %4585 = vmatprep.mubr.msk.f32.mxu0 %vm4869_vm1, %v4868_v40 }
0x183c   :  { %v2903_v38 = vmul.f32 %v4839_v21, %v4835_v26  ;;  %4593 = vmatprep.subr.mxu0 %v4868_v40 }
0x183e   :  { %4581 = vmatmul.mubr.msk.f32.vlgmr.msra.gmra.mrb[48].mxu1 %vm657_vm2, %v2903_v38  ;;  %4586 = vmatmul.mubr.msk.f32.vlgmr.msra.gmra.mrb[30].mxu0 %vm657_vm2, %v3057_v43 }
0x183f   :  { %4589 = vmatpush3.xpose.msk.msra.mxu1 %vm657_vm2, %v3137_v30  ;;  %4590 = vmatprep.mubr.msk.f32.mxu1 %vm4869_vm1, %v4868_v40 }
0x1840   :  { %4598 = vmatprep.subr.mxu1 %v4868_v40  ;;  %4595 = vmatprep.mubr.msk.f32.mxu0 %vm4869_vm1, %v4868_v40 }
0x1842   :  { %4591 = vmatmul.mubr.msk.f32.vlgmr.msra.gmra.mrb[50].mxu1 %vm657_vm2, %v3135_v24 }
0x1843   :  { %4600 = vmatprep.mubr.msk.f32.mxu1 %vm4869_vm1, %v4868_v40 }
0x190d   :  { %v5518_v44 = vpop.f32.mrb[28].mxu0 }
0x190e   :  { %v4577_v46 = vpop.f32.mrb[29].mxu0 }
0x1911   :  { %v5520_v47 = vpop.f32.mrb[48].mxu1  ;;  %v3130_v52 = vpop.f32.mrb[30].mxu0 }
0x1912   :  { %v4691_v55 = vpack.i.bf16 %v5520_v47, %v5518_v44  ;;  %v3212_v56 = vmul.f32 0.35355338, %v3130_v52  ;;  %v4582_v57 = vpop.f32.mrb[49].mxu1  ;;  %v4587_v58 = vpop.f32.mrb[31].mxu0 }
0x1914   :  { %v3214_v59 = vadd.f32 %v3212_v56, %v5159_v12 }
0x1915   :  { %v3208_v60 = vpop.f32.mrb[50].mxu1 }
0x1916   :  { %v3213_v62 = vmul.f32 0.35355338, %v3208_v60  ;;  %v4592_v63 = vpop.f32.mrb[51].mxu1  ;;  %v3216_v2 = vsel %vm657_vm2, %v3214_v59, -inf }
0x1917   :  { %3217 = vmax.xlane.f32.xlu1 %v3216_v2 }
0x1918   :  { %v3215_v7 = vadd.f32 %v3213_v62, %v5159_v12 }
0x191a   :  { %v3219_v8 = vsel %vm657_vm2, %v3215_v7, -inf }
0x191b   :  { %3220 = vmax.xlane.f32.xlu0 %v3219_v8 }
0x1928   :  { %3238 = vrot.lane.b32.xlu1 %v5422_v16, %s4878_s11 }
0x192c   :  { %3392 = vrot.lane.b32.xlu1 %v5422_v16, %s4879_s12 }
0x1930   :  { %3470 = vrot.lane.b32.xlu1 %v5424_v18, %s4879_s12 }
0x1931   :  { %3314 = vrot.lane.b32.xlu0 %v5424_v18, %s4878_s11 }
0x1934   :  { %3390 = vrot.lane.b32.xlu1 %v5422_v16, %s4880_s13 }
0x19a4   :  { %v3218_v9 = vpop.xlane.xlu1 %3217 }
0x19a5   :  { %v3222_v10 = vsub.f32 %v3214_v59, %v3218_v9 }
0x19a7   :  { %v3224_v11 = vmul.f32 1.442695, %v3222_v10 }
0x19a8   :  { %v3239_v13 = vpop.permute.xlu1 %3238  ;;  %v3221_v14 = vpop.xlane.xlu0 %3220 }
0x19a9   :  { %4840 = vpow2.f32 %v3224_v11  ;;  %v3223_v15 = vsub.f32 %v3215_v7, %v3221_v14  ;;  %4594 = vmatpush3.msra.mxu0 %v3239_v13 }
0x19aa   :  { %4603 = vmatprep.subr.mxu0 %v4868_v40 }
0x19ab   :  { %v3226_v48 = vmul.f32 1.442695, %v3223_v15 }
0x19ac   :  { %v3315_v17 = vpop.permute.xlu0 %3314  ;;  %v3393_v31 = vpop.permute.xlu1 %3392 }
0x19ad   :  { %4842 = vpow2.f32 %v3226_v48  ;;  %4599 = vmatpush3.msra.mxu1 %v3315_v17  ;;  %v4767_v17 = vld [vmem:[%s5685_s1 + $0x1e8] sm:$0xff]  }
0x19ae   :  { %4608 = vmatprep.subr.mxu1 %v4868_v40 }
0x19b0   :  { %v3471_v33 = vpop.permute.xlu1 %3470 }
0x19b3   :  { %v4841_v19 = vpop.eup %4840 }
0x19b4   :  { %v3228_v20 = vsel %vm657_vm2, %v4841_v19, 0.0  ;;  %v3391_v36 = vpop.permute.xlu1 %3390 }
0x19b5   :  { %3229 = vadd.xlane.f32.xlu0 %v3228_v20 }
0x19b7   :  { %v4843_v22 = vpop.eup %4842 }
0x19b8   :  { %v3231_v23 = vsel %vm657_vm2, %v4843_v22, 0.0 }
0x19b9   :  { %3232 = vadd.xlane.f32.xlu0 %v3231_v23 }
0x19cf   :  { %3468 = vrot.lane.b32.xlu0 %v5424_v18, %s4880_s13 }
0x1a42   :  { %v3230_v27 = vpop.xlane.xlu0 %3229 }
0x1a43   :  { %4844 = vrcp.f32 %v3230_v27 }
0x1a46   :  { %v3233_v28 = vpop.xlane.xlu0 %3232 }
0x1a47   :  { %4846 = vrcp.f32 %v3233_v28 }
0x1a4a   :  { %v3469_v41 = vpop.permute.xlu0 %3468 }
0x1a4d   :  { %v4845_v32 = vpop.eup %4844 }
0x1a4e   :  { %v3235_v25 = vmul.f32 %v4845_v32, %v4841_v19 }
0x1a50   :  { %4596 = vmatmul.mubr.msk.f32.vlgmr.msra.gmra.mrb[32].mxu0 %vm657_vm2, %v3235_v25 }
0x1a51   :  { %v4847_v34 = vpop.eup %4846  ;;  %4604 = vmatpush3.xpose.msk.msra.mxu0 %vm657_vm2, %v3393_v31  ;;  %4605 = vmatprep.mubr.msk.f32.mxu0 %vm4869_vm1, %v4868_v40 }
0x1a52   :  { %v3237_v26 = vmul.f32 %v4847_v34, %v4843_v22  ;;  %4613 = vmatprep.subr.mxu0 %v4868_v40 }
0x1a54   :  { %4601 = vmatmul.mubr.msk.f32.vlgmr.msra.gmra.mrb[52].mxu1 %vm657_vm2, %v3237_v26  ;;  %4606 = vmatmul.mubr.msk.f32.vlgmr.msra.gmra.mrb[34].mxu0 %vm657_vm2, %v3391_v36 }
0x1a55   :  { %4609 = vmatpush3.xpose.msk.msra.mxu1 %vm657_vm2, %v3471_v33  ;;  %4610 = vmatprep.mubr.msk.f32.mxu1 %vm4869_vm1, %v4868_v40 }
0x1a56   :  { %4618 = vmatprep.subr.mxu1 %v4868_v40  ;;  %4615 = vmatprep.mubr.msk.f32.mxu0 %vm4869_vm1, %v4868_v40 }
0x1a58   :  { %4611 = vmatmul.mubr.msk.f32.vlgmr.msra.gmra.mrb[54].mxu1 %vm657_vm2, %v3469_v41 }
0x1a59   :  { %4620 = vmatprep.mubr.msk.f32.mxu1 %vm4869_vm1, %v4868_v40 }
0x1b23   :  { %v3310_v42 = vpop.f32.mrb[32].mxu0 }
0x1b24   :  { %v4597_v51 = vpop.f32.mrb[33].mxu0 }
0x1b27   :  { %v3386_v6 = vpop.f32.mrb[52].mxu1  ;;  %v3464_v30 = vpop.f32.mrb[34].mxu0 }
0x1b28   :  { %v4696_v37 = vpack.i.bf16 %v3386_v6, %v3310_v42  ;;  %v3546_v21 = vmul.f32 0.35355338, %v3464_v30  ;;  %v4602_v38 = vpop.f32.mrb[53].mxu1  ;;  %v4607_v43 = vpop.f32.mrb[35].mxu0 }
0x1b2a   :  { %v3548_v24 = vadd.f32 %v3546_v21, %v5159_v12 }
0x1b2b   :  { %v3542_v46 = vpop.f32.mrb[54].mxu1 }
0x1b2c   :  { %v3547_v52 = vmul.f32 0.35355338, %v3542_v46  ;;  %v4612_v56 = vpop.f32.mrb[55].mxu1  ;;  %v3550_v57 = vsel %vm657_vm2, %v3548_v24, -inf }
0x1b2d   :  { %3551 = vmax.xlane.f32.xlu1 %v3550_v57 }
0x1b2e   :  { %v3549_v58 = vadd.f32 %v3547_v52, %v5159_v12 }
0x1b30   :  { %v3553_v59 = vsel %vm657_vm2, %v3549_v58, -inf }
0x1b31   :  { %3554 = vmax.xlane.f32.xlu0 %v3553_v59 }
0x1b3e   :  { %3572 = vrot.lane.b32.xlu1 %v5422_v16, %s4881_s14 }
0x1b42   :  { %4692 = vrot.lane.b32.xlu1 %v4691_v55, %s4882_s15 }
0x1b46   :  { %4697 = vrot.lane.b32.xlu1 %v4696_v37, %s4883_s16 }
0x1bba   :  { %v3552_v60 = vpop.xlane.xlu1 %3551 }
0x1bbb   :  { %v3556_v62 = vsub.f32 %v3548_v24, %v3552_v60 }
0x1bbd   :  { %v3558_v63 = vmul.f32 1.442695, %v3556_v62 }
0x1bbe   :  { %v3573_v2 = vpop.permute.xlu1 %3572  ;;  %v3555_v7 = vpop.xlane.xlu0 %3554 }
0x1bbf   :  { %4848 = vpow2.f32 %v3558_v63  ;;  %v3557_v12 = vsub.f32 %v3549_v58, %v3555_v7  ;;  %4614 = vmatpush3.msra.mxu0 %v3573_v2 }
0x1bc0   :  { %4623 = vmatprep.subr.bf16.mxu0 %v4868_v40 }
0x1bc1   :  { %v3560_v8 = vmul.f32 1.442695, %v3557_v12 }
0x1bc2   :  { %v4693_v28 = vpop.permute.xlu1 %4692 }
0x1bc3   :  { %4850 = vpow2.f32 %v3560_v8  ;;  %v4695_v32 = vunpack.i.h.bf16 %v4693_v28  ;;  %v4694_v33 = vunpack.i.l.bf16 %v4693_v28 }
0x1bc5   :  { %v3749_v36 = vsel %vm657_vm2, %v5480_v4, %v4695_v32  ;;  %v3748_v41 = vsel %vm657_vm2, %v5478_v1, %v4694_v33  ;;  %v3762_v1 = vrot.slane %v5411_v61, %v2028_v54  ;;  %v4772_v32 = vld [vmem:[%s5685_s1 + $0x210] sm:$0xff]   ;;  %v4773_v33 = vld [vmem:[%s5685_s1 + $0x218] sm:$0xff]  }
0x1bc6   :  { %v4698_v31 = vpop.permute.xlu1 %4697 }
0x1bc7   :  { %v4700_v25 = vunpack.i.h.bf16 %v4698_v31  ;;  %v4699_v34 = vunpack.i.l.bf16 %v4698_v31 }
0x1bc9   :  { %v4849_v16 = vpop.eup %4848  ;;  %v3751_v6 = vsel %vm2015_vm4, %v3749_v36, %v4700_v25  ;;  %v3750_v30 = vsel %vm2015_vm4, %v3748_v41, %v4699_v34  ;;  %v3867_v25 = vrot.slane %v5411_v61, %v2133_v5  ;;  %v3946_v5 = vrot.slane %v5411_v61, %v2212_v29 }
0x1bca   :  { %v3562_v9 = vsel %vm657_vm2, %v4849_v16, 0.0 }
0x1bcb   :  { %3563 = vadd.xlane.f32.xlu0 %v3562_v9  ;;  %v4768_v9 = vld [vmem:[%s5685_s1 + $0x1f0] sm:$0xff]  }
0x1bcd   :  { %v4851_v44 = vpop.eup %4850 }
0x1bce   :  { %v3565_v47 = vsel %vm657_vm2, %v4851_v44, 0.0 }
0x1bcf   :  { %3566 = vadd.xlane.f32.xlu0 %v3565_v47 }
0x1be5   :  { %3648 = vrot.lane.b32.xlu0 %v5424_v18, %s4881_s14  ;;  %v4766_v18 = vld [vmem:[%s5685_s1 + $0x1e0] sm:$0xff]  }
0x1c58   :  { %v3564_v55 = vpop.xlane.xlu0 %3563 }
0x1c59   :  { %4852 = vrcp.f32 %v3564_v55 }
0x1c5c   :  { %v3567_v10 = vpop.xlane.xlu0 %3566 }
0x1c5d   :  { %4854 = vrcp.f32 %v3567_v10 }
0x1c60   :  { %v3649_v11 = vpop.permute.xlu0 %3648 }
0x1c61   :  { %4619 = vmatpush3.msra.mxu1 %v3649_v11 }
0x1c62   :  { %4631 = vmatprep.subr.bf16.mxu1 %v4868_v40 }
0x1c63   :  { %v4853_v13 = vpop.eup %4852 }
0x1c64   :  { %v3569_v14 = vmul.f32 %v4853_v13, %v4849_v16 }
0x1c66   :  { %4616 = vmatmul.mubr.msk.f32.vlgmr.msra.gmra.mrb[36].mxu0 %vm657_vm2, %v3569_v14 }
0x1c67   :  { %v4855_v15 = vpop.eup %4854  ;;  %4627 = vmatprep.mubr.msk.bf16.mxu0 %vm4869_vm1, %v4868_v40  ;;  %4624 = vmatpush3.bf16.msra.mxu0 %v4766_v18 }
0x1c68   :  { %v3571_v48 = vmul.f32 %v4855_v15, %v4851_v44  ;;  %4625 = vmatprep.subr.bf16.mxu0 %v4868_v40  ;;  %v4769_v44 = vld [vmem:[%s5685_s1 + $0x1f8] sm:$0xff]  }
0x1c6a   :  { %4621 = vmatmul.mubr.msk.f32.vlgmr.msra.gmra.mrb[56].mxu1 %vm657_vm2, %v3571_v48  ;;  %v3850_v48 = vrot.slane %v5411_v61, %v2116_v45  ;;  %v4770_v45 = vld [vmem:[%s5685_s1 + $0x200] sm:$0xff]  }
0x1c6b   :  { %4635 = vmatprep.mubr.msk.bf16.mxu1 %vm4869_vm1, %v4868_v40  ;;  %4626 = vmatpush3.bf16.msra.mxu0 %v4767_v17 }
0x1c6c   :  { %4639 = vmatprep.subr.bf16.mxu0 %v4868_v40  ;;  %4632 = vmatpush3.bf16.msra.mxu1 %v4768_v9 }
0x1c6d   :  { %4633 = vmatprep.subr.bf16.mxu1 %v4868_v40 }
0x1c70   :  { %4634 = vmatpush3.bf16.msra.mxu1 %v4769_v44 }
0x1c71   :  { %4651 = vmatprep.subr.bf16.mxu1 %v4868_v40 }
0x1d39   :  { %v3644_v19 = vpop.f32.mrb[36].mxu0 }
0x1d3a   :  { %v4617_v20 = vpop.f32.mrb[37].mxu0 }
0x1d3d   :  { %v3720_v22 = vpop.f32.mrb[56].mxu1 }
0x1d3e   :  { %v4701_v23 = vpack.i.bf16 %v3720_v22, %v3644_v19  ;;  %v4622_v27 = vpop.f32.mrb[57].mxu1  ;;  %v3856_v22 = vrot.slane %v5411_v61, %v2122_v3  ;;  %v4771_v3 = vld [vmem:[%s5685_s1 + $0x208] sm:$0xff]  }
0x1d40   :  { %4702 = vrot.lane.b32.xlu1 %v4701_v23, %s4884_s21 }
0x1db2   :  { %v4703_v26 = vpop.permute.xlu1 %4702 }
0x1db3   :  { %v4705_v42 = vunpack.i.h.bf16 %v4703_v26  ;;  %v4704_v51 = vunpack.i.l.bf16 %v4703_v26 }
0x1db5   :  { %v3753_v37 = vsel %vm2018_vm5, %v3751_v6, %v4705_v42  ;;  %v3752_v21 = vsel %vm2018_vm5, %v3750_v30, %v4704_v51 }
0x1db6   :  { %v3758_v38 = vpack.c.bf16 %v3753_v37, %v3752_v21 }
0x1db8   :  { %4628 = vmatmul.mubr.msk.bf16.vlgmr.msra.gmra.mrb[40].mxu0 %vm549_vm0, %v3758_v38 }
0x1db9   :  { %4647 = vmatprep.mubr.msk.bf16.mxu0 %vm4869_vm1, %v4868_v40  ;;  %4640 = vmatpush3.bf16.msra.mxu0 %v4770_v45 }
0x1dba   :  { %4641 = vmatprep.subr.bf16.mxu0 %v4868_v40 }
0x1dbd   :  { %4642 = vmatpush3.bf16.msra.mxu0 %v4771_v3 }
0x1dbe   :  { %4643 = vmatprep.subr.bf16.mxu0 %v4868_v40 }
0x1dc1   :  { %4644 = vmatpush3.bf16.msra.mxu0 %v4772_v32 }
0x1dc2   :  { %4645 = vmatprep.subr.bf16.mxu0 %v4868_v40 }
0x1dc5   :  { %4646 = vmatpush3.bf16.msra.mxu0 %v4773_v33 }
0x1e8b   :  { %v3812_v4 = vpop.f32.mrb[40].mxu0 }
0x1e8c   :  { %v3813_v43 = vadd.f32 %v3812_v4, %v3762_v1  ;;  %v4629_v24 = vpop.f32.mrb[41].mxu0 }
0x1e8d   :  { %v3815_v46 = vpop.f32.mrb[42].mxu0 }
0x1e8e   :  { %v5607_v52 = vadd.f32 %v3813_v43, %v5387_v35  ;;  %v3816_v56 = vadd.f32 %v3815_v46, %v3762_v1  ;;  %v4630_v57 = vpop.f32.mrb[43].mxu0 }
0x1e90   :  { %v5610_v58 = vadd.f32 %v3816_v56, %v5390_v39  ;;  %v3821_v59 = vsel %vm549_vm0, %v5607_v52, 0.0 }
0x1e91   :  { %3822 = vadd.xlane.f32.xlu0 %v3821_v59 }
0x1e92   :  { %v3824_v60 = vsel %vm549_vm0, %v5610_v58, 0.0 }
0x1e93   :  { %3825 = vadd.xlane.f32.xlu1 %v3824_v60 }
0x1f1e   :  { %v3823_v54 = vpop.xlane.xlu0 %3822 }
0x1f1f   :  { %v3827_v62 = vmul.f32 0.03125, %v3823_v54 }
0x1f20   :  { %v3826_v63 = vpop.xlane.xlu1 %3825 }
0x1f21   :  { %v3829_v2 = vsub.f32 %v5607_v52, %v3827_v62  ;;  %v3828_v35 = vmul.f32 0.03125, %v3826_v63 }
0x1f23   :  { %v3830_v7 = vsub.f32 %v5610_v58, %v3828_v35  ;;  %v3831_v12 = vmul.f32 %v3829_v2, %v3829_v2 }
0x1f25   :  { %v3833_v39 = vsel %vm549_vm0, %v3831_v12, 0.0  ;;  %v3832_v8 = vmul.f32 %v3830_v7, %v3830_v7 }
0x1f26   :  { %3834 = vadd.xlane.f32.xlu0 %v3833_v39 }
0x1f27   :  { %v3836_v16 = vsel %vm549_vm0, %v3832_v8, 0.0 }
0x1f2a   :  { %3837 = vadd.xlane.f32.xlu0 %v3836_v16 }
0x1fb3   :  { %v3835_v47 = vpop.xlane.xlu0 %3834 }
0x1fb4   :  { %v3839_v55 = vmul.f32 0.03125, %v3835_v47 }
0x1fb6   :  { %v3841_v10 = vadd.f32 1e-06, %v3839_v55  ;;  %v4775_v55 = vld [vmem:[%s5685_s1 + $0x228] sm:$0xff]  }
0x1fb7   :  { %v3838_v11 = vpop.xlane.xlu0 %3837 }
0x1fb8   :  { %4856 = vrsqrt.f32 %v3841_v10  ;;  %v3840_v13 = vmul.f32 0.03125, %v3838_v11 }
0x1fba   :  { %v3842_v14 = vadd.f32 1e-06, %v3840_v13 }
0x1fbc   :  { %4858 = vrsqrt.f32 %v3842_v14 }
0x1fc2   :  { %v4857_v15 = vpop.eup %4856 }
0x1fc3   :  { %v3845_v18 = vmul.f32 %v4857_v15, %v3829_v2 }
0x1fc5   :  { %v3851_v19 = vmul.f32 %v3850_v48, %v3845_v18  ;;  %v4254_v18 = vld [vmem:[%s5687_s2 + $0x18] sm:$0xff] }
0x1fc6   :  { %v4859_v17 = vpop.eup %4858  ;;  %v4065_v32 = vrot.slane %v4254_v18, %v5135_v0 }
0x1fc7   :  { %v3846_v20 = vmul.f32 %v4859_v17, %v3830_v7  ;;  %v3857_v27 = vadd.f32 %v3856_v22, %v3851_v19  ;;  %v4048_v17 = vrot.slane %v4254_v18, %v5117_v50 }
0x1fc9   :  { %v3852_v23 = vmul.f32 %v3850_v48, %v3846_v20 }
0x1fcb   :  { %v3858_v28 = vadd.f32 %v3856_v22, %v3852_v23 }
0x1fcd   :  { %v3863_v31 = vpack.c.bf16 %v3858_v28, %v3857_v27 }
0x1fcf   :  { %4636 = vmatmul.mubr.msk.bf16.vlgmr.msra.gmra.mrb[60].mxu1 %vm549_vm0, %v3863_v31 }
0x1fd0   :  { %4655 = vmatprep.mubr.msk.bf16.mxu1 %vm4869_vm1, %v4868_v40 }
0x20a2   :  { %v3917_v34 = vpop.f32.mrb[60].mxu1 }
0x20a3   :  { %v3918_v26 = vadd.f32 %v3917_v34, %v3867_v25  ;;  %v4637_v36 = vpop.f32.mrb[61].mxu1 }
0x20a4   :  { %v3920_v41 = vpop.f32.mrb[62].mxu1 }
0x20a5   :  { %v3926_v42 = vmul.f32 0.70710677, %v3918_v26  ;;  %v3921_v51 = vadd.f32 %v3920_v41, %v3867_v25  ;;  %v4638_v6 = vpop.f32.mrb[63].mxu1  ;;  %v3924_v1 = vmul.f32 0.5, %v3918_v26 }
0x20a7   :  { %4860 = verf.f32 %v3926_v42  ;;  %v3927_v30 = vmul.f32 0.70710677, %v3921_v51  ;;  %v3925_v4 = vmul.f32 0.5, %v3921_v51 }
0x20a9   :  { %4862 = verf.f32 %v3927_v30 }
0x20b1   :  { %v4861_v37 = vpop.eup %4860 }
0x20b2   :  { %v3930_v21 = vadd.f32 1.0, %v4861_v37 }
0x20b3   :  { %v4863_v38 = vpop.eup %4862 }
0x20b4   :  { %v3931_v43 = vadd.f32 1.0, %v4863_v38  ;;  %v3932_v24 = vmul.f32 %v3930_v21, %v3924_v1 }
0x20b6   :  { %v3933_v46 = vmul.f32 %v3931_v43, %v3925_v4 }
0x20b8   :  { %v3942_v56 = vpack.c.bf16 %v3933_v46, %v3932_v24 }
0x20ba   :  { %4648 = vmatmul.mubr.msk.bf16.vlgmr.msra.gmra.mrb[44].mxu0 %vm2238_vm6, %v3942_v56 }
0x218d   :  { %v4008_v57 = vpop.f32.mrb[44].mxu0 }
0x218e   :  { %v4009_v59 = vadd.f32 %v4008_v57, %v3946_v5  ;;  %v4649_v60 = vpop.f32.mrb[45].mxu0 }
0x218f   :  { %v4011_v54 = vpop.f32.mrb[46].mxu0 }
0x2190   :  { %v4015_v62 = vadd.f32 %v4009_v59, %v5607_v52  ;;  %v4012_v63 = vadd.f32 %v4011_v54, %v3946_v5  ;;  %v4650_v2 = vpop.f32.mrb[47].mxu0 }
0x2192   :  { %v4016_v35 = vadd.f32 %v4012_v63, %v5610_v58  ;;  %v4019_v7 = vsel %vm549_vm0, %v4015_v62, 0.0  ;;  %v4774_v58 = vld [vmem:[%s5685_s1 + $0x220] sm:$0xff]  }
0x2193   :  { %4020 = vadd.xlane.f32.xlu0 %v4019_v7  ;;  %4652 = vmatpush3.bf16.msra.mxu1 %v4774_v58 }
0x2194   :  { %v4022_v12 = vsel %vm549_vm0, %v4016_v35, 0.0  ;;  %4653 = vmatprep.subr.bf16.mxu1 %v4868_v40  ;;  %v4054_v40 = vrot.slane %v4254_v18, %v5125_v53 }
0x2195   :  { %4023 = vadd.xlane.f32.xlu1 %v4022_v12 }
0x2197   :  { %4654 = vmatpush3.bf16.msra.mxu1 %v4775_v55 }
0x2220   :  { %v4021_v39 = vpop.xlane.xlu0 %4020 }
0x2221   :  { %v4025_v49 = vmul.f32 0.03125, %v4021_v39 }
0x2222   :  { %v4024_v8 = vpop.xlane.xlu1 %4023 }
0x2223   :  { %v4027_v29 = vsub.f32 %v4015_v62, %v4025_v49  ;;  %v4026_v61 = vmul.f32 0.03125, %v4024_v8 }
0x2225   :  { %v4028_v16 = vsub.f32 %v4016_v35, %v4026_v61  ;;  %v4029_v9 = vmul.f32 %v4027_v29, %v4027_v29 }
0x2227   :  { %v4031_v44 = vsel %vm549_vm0, %v4029_v9, 0.0  ;;  %v4030_v52 = vmul.f32 %v4028_v16, %v4028_v16 }
0x2228   :  { %4032 = vadd.xlane.f32.xlu0 %v4031_v44 }
0x2229   :  { %v4034_v47 = vsel %vm549_vm0, %v4030_v52, 0.0 }
0x222a   :  { %4035 = vadd.xlane.f32.xlu1 %v4034_v47 }
0x22b5   :  { %v4033_v10 = vpop.xlane.xlu0 %4032 }
0x22b6   :  { %v4037_v11 = vmul.f32 0.03125, %v4033_v10 }
0x22b7   :  { %v4036_v13 = vpop.xlane.xlu1 %4035 }
0x22b8   :  { %v4039_v14 = vadd.f32 1e-06, %v4037_v11  ;;  %v4038_v15 = vmul.f32 0.03125, %v4036_v13 }
0x22ba   :  { %4864 = vrsqrt.f32 %v4039_v14  ;;  %v4040_v48 = vadd.f32 1e-06, %v4038_v15 }
0x22bc   :  { %4866 = vrsqrt.f32 %v4040_v48 }
0x22c4   :  { %v4865_v19 = vpop.eup %4864 }
0x22c5   :  { %v4043_v20 = vmul.f32 %v4865_v19, %v4027_v29 }
0x22c6   :  { %v4867_v22 = vpop.eup %4866 }
0x22c7   :  { %v4049_v23 = vmul.f32 %v4048_v17, %v4043_v20  ;;  %v4044_v27 = vmul.f32 %v4867_v22, %v4028_v16 }
0x22c9   :  { %v4050_v28 = vmul.f32 %v4048_v17, %v4044_v27  ;;  %v4055_v31 = vadd.f32 %v4054_v40, %v4049_v23 }
0x22cb   :  { %v4056_v45 = vadd.f32 %v4054_v40, %v4050_v28 }
0x22cd   :  { %v4061_v3 = vpack.c.bf16 %v4056_v45, %v4055_v31 }
0x22cf   :  { %4656 = vmatmul.mubr.msk.bf16.vlgmr.msra.gmra.mrb[64].mxu1 %vm549_vm0, %v4061_v3 }
0x23a2   :  { %v4115_v33 = vpop.f32.mrb[64].mxu1 }
0x23a3   :  { %v4116_v25 = vadd.f32 %v4115_v33, %v4065_v32  ;;  %v4657_v34 = vpop.f32.mrb[65].mxu1 }
0x23a4   :  { %v4118_v26 = vpop.f32.mrb[66].mxu1 }
0x23a5   :  { %4122 = vst [vmem:[%s5688_s3] sm:$0xff] %v4116_v25  ;;  %v4119_v50 = vadd.f32 %v4118_v26, %v4065_v32  ;;  %v4658_v53 = vpop.f32.mrb[67].mxu1 }
0x23a7   :  { %4123 = vst [vmem:[%s5688_s3 + $0x8] sm:$0xff] %v4119_v50 }

</bundles_post_ra>
